<compile_context>
chip_gen: v6e
topology: v6e:2x2x1
jax: 0.10.0
libtpu: 0.0.40
codegen_flags: <defaults>
</compile_context>

<pallas_src>
import functools

import jax
import jax.numpy as jnp
from jax import lax
from jax.experimental import pallas as pl
from jax.experimental.pallas import tpu as pltpu


_CONTRACT_LAST = (((1,), (1,)), ((), ()))   # contract the channel (last) dim of both operands


def _chamfer_batch_kernel(test_ref, train_ref, loss_ref, *, n_pts, t_batch):
    # test_ref : (N, 8)       augmented test rows  [x0, x1, x2, |x|^2, 1, 0, 0, 0]
    # train_ref: (T*N, 8)     augmented train rows [-2y0, -2y1, -2y2, 1, |y|^2, 0, 0, 0]
    # loss_ref : (1, 1, T, 1) chamfer loss for each train cloud in this tile
    xa = test_ref[...]                                    # (N, 8), live across all chunks

    rmins = []   # test -> train direction: min over train points, (1, N_test) each
    cmins = []   # train -> test direction: min over test points,  (1, N_train) each
    for t in range(t_batch):                              # static unroll; fused per chunk
        ya = train_ref[pl.ds(t * n_pts, n_pts), :]        # (N, 8) chunk for train cloud t
        # Squared pairwise distances straight off the MXU (augmented matmul), in both
        # orientations so both directional mins are cheap sublane reductions.
        d2 = lax.dot_general(xa, ya, _CONTRACT_LAST,
                             preferred_element_type=jnp.float32)   # (N_test, N_train)
        d2t = lax.dot_general(ya, xa, _CONTRACT_LAST,
                              preferred_element_type=jnp.float32)  # (N_train, N_test)
        cmins.append(jnp.min(d2, axis=0, keepdims=True))   # (1, N_train)
        rmins.append(jnp.min(d2t, axis=0, keepdims=True))  # (1, N_test)

    # Packed epilogue: one sqrt + one lane-reduction per direction for the whole tile.
    # sqrt is monotone, so reducing over squared distances first is exact; the clamp
    # guards against tiny negatives from f32 cancellation.
    r_all = jnp.concatenate(rmins, axis=0)                # (T, N)
    c_all = jnp.concatenate(cmins, axis=0)                # (T, N)
    d_r = jnp.sqrt(jnp.maximum(r_all, 0.0))
    d_c = jnp.sqrt(jnp.maximum(c_all, 0.0))
    loss = (jnp.sum(d_r, axis=1, keepdims=True)
            + jnp.sum(d_c, axis=1, keepdims=True)) * (1.0 / n_pts)   # (T, 1)
    loss_ref[...] = loss.reshape(1, 1, t_batch, 1)


def _pick_train_batch(b_train, n_pts):
    """Pick train-clouds-per-step T from an explicit (lane-padded) VMEM budget."""
    def vmem_bytes(t):
        train_buf = 2 * t * n_pts * 128 * 4    # (T*N, 8) padded to 128 lanes, double-buffered
        test_buf = 2 * n_pts * 128 * 4         # (N, 8) padded, double-buffered
        xa_live = n_pts * 128 * 4              # loaded test operand
        chunk_live = 2 * n_pts * n_pts * 4     # d2 + d2t for one chunk
        epilogue = 4 * t * n_pts * 4 + 2 * t * 4096
        return train_buf + test_buf + xa_live + chunk_live + epilogue

    t = max(1, min(32, b_train))
    while t > 1 and vmem_bytes(t) > (24 << 20):     # safe on v5e/v6e/v7x
        t = (t + 1) // 2
    return t, vmem_bytes(t)


@jax.jit
def oracle_nn_forward(train_gt, test_gt):
    """Equivalent of Oracle_NN.forward(train_gt, test_gt).

    Returns (mean_min_loss, predict_ptcloud, min_idx, min_loss_per_test)."""
    B_train, N, D = train_gt.shape
    B_test = test_gt.shape[0]

    T, vmem_budget = _pick_train_batch(B_train, N)
    Gj = -(-B_train // T)                 # cdiv
    B_pad = Gj * T
    if B_pad != B_train:                  # pad with copies of the last cloud (sliced off later)
        pad = jnp.broadcast_to(train_gt[-1:], (B_pad - B_train, N, D))
        train_pad = jnp.concatenate([train_gt, pad], axis=0)
    else:
        train_pad = train_gt

    # Augmented rows (channel dim padded 5 -> 8):
    #   test row  i: [ x_i, |x_i|^2, 1, 0, 0, 0 ]
    #   train row j: [ -2*y_j, 1, |y_j|^2, 0, 0, 0 ]
    # so that <test_row_i, train_row_j> == |x_i - y_j|^2 comes straight off the MXU.
    f32 = jnp.float32
    x = test_gt.astype(f32)
    y = train_pad.astype(f32)
    xx = jnp.sum(x * x, axis=-1, keepdims=True)
    yy = jnp.sum(y * y, axis=-1, keepdims=True)
    test_aug = jnp.concatenate(
        [x, xx, jnp.ones_like(xx), jnp.zeros((B_test, N, 3), f32)], axis=-1)        # (B_test, N, 8)
    train_aug = jnp.concatenate(
        [-2.0 * y, jnp.ones_like(yy), yy, jnp.zeros((B_pad, N, 3), f32)], axis=-1)  # (B_pad, N, 8)
    train_aug = train_aug.reshape(Gj, T * N, 8)

    kernel = functools.partial(_chamfer_batch_kernel, n_pts=N, t_batch=T)
    cost = pl.CostEstimate(
        flops=2 * 2 * B_test * B_pad * N * N * 8,
        transcendentals=2 * B_test * B_pad * N,
        bytes_accessed=(B_pad * N * 8 + Gj * B_test * N * 8 + B_test * B_pad) * 4,
    )

    loss_tiles = pl.pallas_call(
        kernel,
        out_shape=jax.ShapeDtypeStruct((B_test, Gj, T, 1), jnp.float32),
        grid_spec=pltpu.PrefetchScalarGridSpec(
            num_scalar_prefetch=0,
            grid=(Gj, B_test),            # train tile on the outer axis -> DMA'd once per row
            in_specs=[
                pl.BlockSpec((pl.Squeezed(), N, 8), lambda tj, ti: (ti, 0, 0)),       # test cloud
                pl.BlockSpec((pl.Squeezed(), T * N, 8), lambda tj, ti: (tj, 0, 0)),   # train tile
            ],
            out_specs=pl.BlockSpec((1, 1, T, 1), lambda tj, ti: (ti, tj, 0, 0)),
        ),
        compiler_params=pltpu.CompilerParams(
            dimension_semantics=("parallel", "parallel"),   # disjoint output tiles, no scratch
            vmem_limit_bytes=int(min(vmem_budget + (16 << 20), 48 << 20)),
        ),
        cost_estimate=cost,
    )(test_aug, train_aug)

    loss_mat = loss_tiles.reshape(B_test, B_pad)[:, :B_train]

    # Oracle_NN.NN: scan the train set, keep the first index beating the running
    # minimum (init 1000.0).  jnp.argmin breaks ties toward the first index, which
    # matches the strict `<` update of the torch loop.
    per_test_min = jnp.min(loss_mat, axis=1)
    per_test_arg = jnp.argmin(loss_mat, axis=1).astype(jnp.int32)
    min_idx = jnp.where(per_test_min < 1000.0, per_test_arg, 0)
    min_loss = jnp.minimum(per_test_min, 1000.0)

    predict_ptcloud = train_gt[min_idx]           # (B_test, N, 3)
    mean_loss = jnp.mean(min_loss)                # torch.mean(loss_all)
    return mean_loss, predict_ptcloud, min_idx, min_loss


if __name__ == "__main__":
    key = jax.random.PRNGKey(0)
    k1, k2 = jax.random.split(key)
    B_train, B_test, N, D = 4, 2, 128, 3
    train_gt = jax.random.uniform(k1, (B_train, N, D), dtype=jnp.float32)
    test_gt = jax.random.uniform(k2, (B_test, N, D), dtype=jnp.float32)

    mean_loss, pred, min_idx, min_loss = oracle_nn_forward(train_gt, test_gt)
    jax.block_until_ready((mean_loss, pred, min_idx, min_loss))

    # Pure-JAX reference of ChamfersDistance3 + nearest-neighbour selection.
    def chamfer_ref(a, b):
        d = jnp.sqrt(jnp.sum((a[:, None, :] - b[None, :, :]) ** 2, axis=-1))
        return jnp.mean(jnp.min(d, axis=1)) + jnp.mean(jnp.min(d, axis=0))

    ref_mat = jnp.stack([
        jnp.stack([chamfer_ref(test_gt[i], train_gt[j]) for j in range(B_train)])
        for i in range(B_test)])
    ref_min = jnp.min(ref_mat, axis=1)
    ref_idx = jnp.argmin(ref_mat, axis=1).astype(jnp.int32)

    assert jnp.allclose(min_loss, ref_min, rtol=1e-4, atol=1e-4)
    assert jnp.array_equal(min_idx, ref_idx)
    assert jnp.allclose(mean_loss, jnp.mean(ref_min), rtol=1e-4, atol=1e-4)
    assert jnp.allclose(pred, train_gt[ref_idx])

    print("KERNEL_OK")
</pallas_src>

<mosaic_0001>
module attributes {stable_mosaic.version = 11 : i64} {
  func.func @_chamfer_batch_kernel(%arg0: i32, %arg1: i32, %arg2: memref<1x128x8xf32, #tpu.memory_space<vmem>>, %arg3: memref<1x512x8xf32, #tpu.memory_space<vmem>>, %arg4: memref<1x1x4x1xf32, #tpu.memory_space<vmem>>) attributes {dimension_semantics = [#tpu.dimension_semantics<parallel>, #tpu.dimension_semantics<parallel>], iteration_bounds = array<i64: 1, 2>, scalar_prefetch = 0 : i64, scratch_operands = 0 : i64, tpu.core_type = #tpu.core_type<tc>, window_params = [{transform_indices = @transform_0, window_bounds = array<i64: 1, 128, 8>}, {transform_indices = @transform_1, window_bounds = array<i64: 1, 512, 8>}, {transform_indices = @transform_2, window_bounds = array<i64: 1, 1, 4, 1>}]} {
    %c0 = arith.constant 0 : index
    %c0_0 = arith.constant 0 : index
    %c0_1 = arith.constant 0 : index
    %0 = vector.load %arg2[%c0, %c0_0, %c0_1] : memref<1x128x8xf32, #tpu.memory_space<vmem>>, vector<1x128x8xf32>
    %1 = vector.shape_cast %0 : vector<1x128x8xf32> to vector<128x8xf32>
    %c0_2 = arith.constant 0 : index
    %c0_3 = arith.constant 0 : index
    %c0_4 = arith.constant 0 : index
    %2 = vector.load %arg3[%c0_2, %c0_3, %c0_4] : memref<1x512x8xf32, #tpu.memory_space<vmem>>, vector<1x128x8xf32>
    %3 = vector.shape_cast %2 : vector<1x128x8xf32> to vector<128x8xf32>
    %cst = arith.constant dense<0.000000e+00> : vector<128x128xf32>
    %4 = tpu.matmul %1, %3, %cst {dimension_numbers = #tpu.dot_dimension_numbers<[1], [1], [0], [0], [0, 0, 1, 0], [], []>} : vector<128x8xf32>, vector<128x8xf32>, vector<128x128xf32> -> vector<128x128xf32>
    %cst_5 = arith.constant dense<0.000000e+00> : vector<128x128xf32>
    %5 = tpu.matmul %3, %1, %cst_5 {dimension_numbers = #tpu.dot_dimension_numbers<[1], [1], [0], [0], [0, 0, 1, 0], [], []>} : vector<128x8xf32>, vector<128x8xf32>, vector<128x128xf32> -> vector<128x128xf32>
    %cst_6 = arith.constant dense<0x7F800000> : vector<128xf32>
    %6 = vector.multi_reduction <minimumf>, %4, %cst_6 [0] : vector<128x128xf32> to vector<128xf32>
    %7 = vector.shape_cast %6 : vector<128xf32> to vector<1x128xf32>
    %cst_7 = arith.constant dense<0x7F800000> : vector<128xf32>
    %8 = vector.multi_reduction <minimumf>, %5, %cst_7 [0] : vector<128x128xf32> to vector<128xf32>
    %9 = vector.shape_cast %8 : vector<128xf32> to vector<1x128xf32>
    %c0_8 = arith.constant 0 : index
    %c128 = arith.constant 128 : index
    %c0_9 = arith.constant 0 : index
    %10 = vector.load %arg3[%c0_8, %c128, %c0_9] : memref<1x512x8xf32, #tpu.memory_space<vmem>>, vector<1x128x8xf32>
    %11 = vector.shape_cast %10 : vector<1x128x8xf32> to vector<128x8xf32>
    %cst_10 = arith.constant dense<0.000000e+00> : vector<128x128xf32>
    %12 = tpu.matmul %1, %11, %cst_10 {dimension_numbers = #tpu.dot_dimension_numbers<[1], [1], [0], [0], [0, 0, 1, 0], [], []>} : vector<128x8xf32>, vector<128x8xf32>, vector<128x128xf32> -> vector<128x128xf32>
    %cst_11 = arith.constant dense<0.000000e+00> : vector<128x128xf32>
    %13 = tpu.matmul %11, %1, %cst_11 {dimension_numbers = #tpu.dot_dimension_numbers<[1], [1], [0], [0], [0, 0, 1, 0], [], []>} : vector<128x8xf32>, vector<128x8xf32>, vector<128x128xf32> -> vector<128x128xf32>
    %cst_12 = arith.constant dense<0x7F800000> : vector<128xf32>
    %14 = vector.multi_reduction <minimumf>, %12, %cst_12 [0] : vector<128x128xf32> to vector<128xf32>
    %15 = vector.shape_cast %14 : vector<128xf32> to vector<1x128xf32>
    %cst_13 = arith.constant dense<0x7F800000> : vector<128xf32>
    %16 = vector.multi_reduction <minimumf>, %13, %cst_13 [0] : vector<128x128xf32> to vector<128xf32>
    %17 = vector.shape_cast %16 : vector<128xf32> to vector<1x128xf32>
    %c0_14 = arith.constant 0 : index
    %c256 = arith.constant 256 : index
    %c0_15 = arith.constant 0 : index
    %18 = vector.load %arg3[%c0_14, %c256, %c0_15] : memref<1x512x8xf32, #tpu.memory_space<vmem>>, vector<1x128x8xf32>
    %19 = vector.shape_cast %18 : vector<1x128x8xf32> to vector<128x8xf32>
    %cst_16 = arith.constant dense<0.000000e+00> : vector<128x128xf32>
    %20 = tpu.matmul %1, %19, %cst_16 {dimension_numbers = #tpu.dot_dimension_numbers<[1], [1], [0], [0], [0, 0, 1, 0], [], []>} : vector<128x8xf32>, vector<128x8xf32>, vector<128x128xf32> -> vector<128x128xf32>
    %cst_17 = arith.constant dense<0.000000e+00> : vector<128x128xf32>
    %21 = tpu.matmul %19, %1, %cst_17 {dimension_numbers = #tpu.dot_dimension_numbers<[1], [1], [0], [0], [0, 0, 1, 0], [], []>} : vector<128x8xf32>, vector<128x8xf32>, vector<128x128xf32> -> vector<128x128xf32>
    %cst_18 = arith.constant dense<0x7F800000> : vector<128xf32>
    %22 = vector.multi_reduction <minimumf>, %20, %cst_18 [0] : vector<128x128xf32> to vector<128xf32>
    %23 = vector.shape_cast %22 : vector<128xf32> to vector<1x128xf32>
    %cst_19 = arith.constant dense<0x7F800000> : vector<128xf32>
    %24 = vector.multi_reduction <minimumf>, %21, %cst_19 [0] : vector<128x128xf32> to vector<128xf32>
    %25 = vector.shape_cast %24 : vector<128xf32> to vector<1x128xf32>
    %c0_20 = arith.constant 0 : index
    %c384 = arith.constant 384 : index
    %c0_21 = arith.constant 0 : index
    %26 = vector.load %arg3[%c0_20, %c384, %c0_21] : memref<1x512x8xf32, #tpu.memory_space<vmem>>, vector<1x128x8xf32>
    %27 = vector.shape_cast %26 : vector<1x128x8xf32> to vector<128x8xf32>
    %cst_22 = arith.constant dense<0.000000e+00> : vector<128x128xf32>
    %28 = tpu.matmul %1, %27, %cst_22 {dimension_numbers = #tpu.dot_dimension_numbers<[1], [1], [0], [0], [0, 0, 1, 0], [], []>} : vector<128x8xf32>, vector<128x8xf32>, vector<128x128xf32> -> vector<128x128xf32>
    %cst_23 = arith.constant dense<0.000000e+00> : vector<128x128xf32>
    %29 = tpu.matmul %27, %1, %cst_23 {dimension_numbers = #tpu.dot_dimension_numbers<[1], [1], [0], [0], [0, 0, 1, 0], [], []>} : vector<128x8xf32>, vector<128x8xf32>, vector<128x128xf32> -> vector<128x128xf32>
    %cst_24 = arith.constant dense<0x7F800000> : vector<128xf32>
    %30 = vector.multi_reduction <minimumf>, %28, %cst_24 [0] : vector<128x128xf32> to vector<128xf32>
    %31 = vector.shape_cast %30 : vector<128xf32> to vector<1x128xf32>
    %cst_25 = arith.constant dense<0x7F800000> : vector<128xf32>
    %32 = vector.multi_reduction <minimumf>, %29, %cst_25 [0] : vector<128x128xf32> to vector<128xf32>
    %33 = vector.shape_cast %32 : vector<128xf32> to vector<1x128xf32>
    %34 = tpu.concatenate %9, %17, %25, %33 in 0 : vector<1x128xf32>, vector<1x128xf32>, vector<1x128xf32>, vector<1x128xf32> -> vector<4x128xf32>
    %35 = tpu.concatenate %7, %15, %23, %31 in 0 : vector<1x128xf32>, vector<1x128xf32>, vector<1x128xf32>, vector<1x128xf32> -> vector<4x128xf32>
    %cst_26 = arith.constant 0.000000e+00 : f32
    %36 = vector.broadcast %cst_26 : f32 to vector<4x128xf32>
    %37 = arith.maximumf %34, %36 : vector<4x128xf32>
    %38 = math.sqrt %37 : vector<4x128xf32>
    %cst_27 = arith.constant 0.000000e+00 : f32
    %39 = vector.broadcast %cst_27 : f32 to vector<4x128xf32>
    %40 = arith.maximumf %35, %39 : vector<4x128xf32>
    %41 = math.sqrt %40 : vector<4x128xf32>
    %cst_28 = arith.constant dense<0.000000e+00> : vector<4xf32>
    %42 = vector.multi_reduction <add>, %38, %cst_28 [1] : vector<4x128xf32> to vector<4xf32>
    %43 = vector.shape_cast %42 : vector<4xf32> to vector<4x1xf32>
    %cst_29 = arith.constant dense<0.000000e+00> : vector<4xf32>
    %44 = vector.multi_reduction <add>, %41, %cst_29 [1] : vector<4x128xf32> to vector<4xf32>
    %45 = vector.shape_cast %44 : vector<4xf32> to vector<4x1xf32>
    %46 = arith.addf %43, %45 : vector<4x1xf32>
    %cst_30 = arith.constant 7.812500e-03 : f32
    %47 = vector.broadcast %cst_30 : f32 to vector<4x1xf32>
    %48 = arith.mulf %46, %47 : vector<4x1xf32>
    %49 = vector.shape_cast %48 : vector<4x1xf32> to vector<1x1x4x1xf32>
    %c0_31 = arith.constant 0 : index
    %c0_32 = arith.constant 0 : index
    %c0_33 = arith.constant 0 : index
    %c0_34 = arith.constant 0 : index
    %50 = vector.load %arg4[%c0_31, %c0_32, %c0_33, %c0_34] : memref<1x1x4x1xf32, #tpu.memory_space<vmem>>, vector<1x1x4x1xf32>
    tpu.vector_store %arg4[%c0_31, %c0_32, %c0_33, %c0_34], %49 {strides = array<i32>} : memref<1x1x4x1xf32, #tpu.memory_space<vmem>>, vector<1x1x4x1xf32>,
    return
  }
  func.func @transform_0(%arg0: i32, %arg1: i32) -> (i32, i32, i32) {
    %c0_i32 = arith.constant 0 : i32
    %c0_i32_0 = arith.constant 0 : i32
    %c0_i32_1 = arith.constant 0 : i32
    return %arg1, %c0_i32, %c0_i32_0 : i32, i32, i32
  }
  func.func @transform_1(%arg0: i32, %arg1: i32) -> (i32, i32, i32) {
    %c0_i32 = arith.constant 0 : i32
    %c0_i32_0 = arith.constant 0 : i32
    %c0_i32_1 = arith.constant 0 : i32
    return %arg0, %c0_i32, %c0_i32_0 : i32, i32, i32
  }
  func.func @transform_2(%arg0: i32, %arg1: i32) -> (i32, i32, i32, i32) {
    %c0_i32 = arith.constant 0 : i32
    %c0_i32_0 = arith.constant 0 : i32
    %c0_i32_1 = arith.constant 0 : i32
    return %arg1, %arg0, %c0_i32, %c0_i32_0 : i32, i32, i32, i32
  }
}

</mosaic_0001>

<bundles_post_ra>
// kernel: oracle_nn_forward.1
= control target key start
LH: loop header
LB: loop body
LE: loop exit
PB: predicated region body
PF: predicated region fallthrough
CT: control target
= control target key end

     0   :  { %s2993_s9 = smov 0   ;;  %s2995_s10 = smov 0   ;;  %s4107_s0 = inlined_call_operand.vmem [shape: f32[2,128,8], index: 0, kind: input, shape index: {}]   ;;  %s4108_s1 = inlined_call_operand.vmem [shape: f32[1,512,8], index: 1, kind: input, shape index: {}]   ;;  %s4109_s2 = inlined_call_operand.vmem [shape: f32[2,1,4,1], index: 2, kind: output, shape index: {}]  }
   0x1   :  { %s2997_s11 = smov 0  }
   0x2 LB: > { %s21_s12 = sadd.s32 1, %s2972_s10  ;;  %p1959_p0 = scmp.ge.s32.totalorder %s2976_s11, 1  ;;  %s2976_s11 = sphi %s2997_s11, %s12_s11   ;;  %s2972_s10 = sphi %s2995_s10, %s4111_s10   ;;  %s2968_s9 = sphi %s2993_s9, %s4110_s9  }
   0x3   : > { %p22_p1 = scmp.ge.s32.totalorder %s21_s12, 2  ;;  %p136_p2 = scmp.lt.s32.totalorder %s2976_s11, 3 }
   0x5   : > { %s4113_s12 = smov (%p22_p1, %s21_s12), 0  ;;  %p137_p3 = pnand %p1959_p0, %p136_p2 }
   0x6   : > { %p165_p4 = scmp.lt.s32.totalorder (!%p137_p3), %s2968_s9, 1 }
   0x7   : > { %140 = sbr.rel (%p137_p3) target bundleno = 682 (0x2aa), region = 28 }
   0xc   : > { %v3014_v0 = vld [vmem:[%s4108_s1 + $0x78] sm:$0xff]  ;;  %vm214_vm0 = vcmask 64512   ;;  %v3019_v1 = vld [vmem:[%s4108_s1 + $0x70] sm:$0xff]  ;;  %s4115_s9 = smov (!%p165_p4, %s2968_s9), 1  ;;  %v3033_v2 = vld [vmem:[%s4108_s1 + $0x68] sm:$0xff]  ;;  %vm1831_vm1 = vcmask 1040384  }
   0xd   : > { %2478 = vmatprep.subr.msk.mxu0 %vm214_vm0, %v3014_v0  ;;  %s2221_s17 = sshll.u32 %s4115_s9, 7  ;;  %v3043_v3 = vld [vmem:[%s4108_s1] sm:$0xff]  ;;  %v3083_v9 = vld [vmem:[%s4108_s1 + $0x58] sm:$0xff]  ;;  %v3101_v11 = vld [vmem:[%s4108_s1 + $0x50] sm:$0xff]  ;;  %vm1833_vm2 = vcmask 1041408   ;;  %vm1835_vm3 = vcmask 1042432  }
   0xe   : > { %2479 = vmatpush3.xpose.msk.msra.mxu0 %vm214_vm0, %v3014_v0  ;;  %s3038_s22 = scalar_lea.vmem %s4107_s0, %s2221_s17  ;;  %2566 = vmatprep.mubr.msk.f32.mxu1 %vm214_vm0, %v3043_v3  ;;  %v3064_v6 = vld [vmem:[%s4108_s1 + $0x60] sm:$0xff]  ;;  %v3117_v13 = vld [vmem:[%s4108_s1 + $0x48] sm:$0xff]  ;;  %v3149_v17 = vld [vmem:[%s4108_s1 + $0x38] sm:$0xff]  ;;  %vm1856_vm7 = vcmask 1043456   ;;  %s1962_s26 = sshll.u32 %s4115_s9, 2  ;;  %vm1865_vm9 = vcmask 3072  }
   0xf   : > { %2480 = vmatprep.subr.msk.mxu0 %vm214_vm0, %v3019_v1  ;;  %v3048_v4 = vld [vmem:[%s3038_s22 + $0x78] sm:$0xff]  ;;  %v3051_v5 = vld [vmem:[%s3038_s22 + $0x70] sm:$0xff]  ;;  %v3071_v7 = vld [vmem:[%s3038_s22 + $0x68] sm:$0xff]  ;;  %s181_s28 = scalar_lea.vmem %s4109_s2, %s1962_s26 }
  0x10   : > { %2534 = vmatprep.subr.msk.mxu1 %vm214_vm0, %v3048_v4  ;;  %v3076_v8 = vld [vmem:[%s3038_s22] sm:$0xff]  ;;  %v3108_v12 = vld [vmem:[%s3038_s22 + $0x58] sm:$0xff]  ;;  %v3124_v14 = vld [vmem:[%s3038_s22 + $0x50] sm:$0xff] }
  0x11   : > { %2535 = vmatpush3.xpose.msk.msra.mxu1 %vm214_vm0, %v3048_v4  ;;  %2510 = vmatprep.mubr.msk.f32.mxu0 %vm214_vm0, %v3076_v8  ;;  %v3092_v10 = vld [vmem:[%s3038_s22 + $0x60] sm:$0xff]  ;;  %v3140_v16 = vld [vmem:[%s3038_s22 + $0x48] sm:$0xff]  ;;  %v3165_v19 = vld [vmem:[%s4108_s1 + $0x30] sm:$0xff] }
  0x12   : > { %2481 = vmatpush3.xpose.msk.msra.mxu0 %vm214_vm0, %v3019_v1  ;;  %2536 = vmatprep.subr.msk.mxu1 %vm214_vm0, %v3051_v5  ;;  %v3133_v15 = vld [vmem:[%s4108_s1 + $0x40] sm:$0xff]  ;;  %v3172_v20 = vld [vmem:[%s3038_s22 + $0x38] sm:$0xff]  ;;  %v3181_v21 = vld [vmem:[%s4108_s1 + $0x28] sm:$0xff] }
  0x13   : > { %2482 = vmatprep.subr.msk.mxu0 %vm214_vm0, %v3033_v2  ;;  %v3156_v18 = vld [vmem:[%s3038_s22 + $0x40] sm:$0xff]  ;;  %v3188_v22 = vld [vmem:[%s3038_s22 + $0x30] sm:$0xff]  ;;  %v3202_v24 = vld [vmem:[%s3038_s22 + $0x28] sm:$0xff] }
  0x14   : > { %v202_v23 = vld [vmem:[%s4108_s1 + $0x20] sm:$0xff]  ;;  %v201_v25 = vld [vmem:[%s4108_s1 + $0x18] sm:$0xff]  ;;  %v200_v27 = vld [vmem:[%s4108_s1 + $0x10] sm:$0xff] }
  0x15   : > { %2537 = vmatpush3.xpose.msk.msra.mxu1 %vm214_vm0, %v3051_v5  ;;  %v3214_v26 = vld [vmem:[%s3038_s22 + $0x20] sm:$0xff]  ;;  %v3226_v28 = vld [vmem:[%s3038_s22 + $0x18] sm:$0xff]  ;;  %v199_v29 = vld [vmem:[%s4108_s1 + $0x8] sm:$0xff] }
  0x16   : > { %2483 = vmatpush3.xpose.msk.msra.mxu0 %vm214_vm0, %v3033_v2  ;;  %2538 = vmatprep.subr.msk.mxu1 %vm214_vm0, %v3071_v7  ;;  %v3238_v30 = vld [vmem:[%s3038_s22 + $0x10] sm:$0xff]  ;;  %v3247_v31 = vld [vmem:[%s3038_s22 + $0x8] sm:$0xff]  ;;  %v3256_v32 = vld [vmem:[%s4108_s1 + $0xf8] sm:$0xff] }
  0x17   : > { %2484 = vmatprep.subr.msk.mxu0 %vm214_vm0, %v3064_v6  ;;  %v3269_v33 = vld [vmem:[%s4108_s1 + $0xf0] sm:$0xff]  ;;  %v3286_v34 = vld [vmem:[%s4108_s1 + $0xe8] sm:$0xff]  ;;  %v3305_v35 = vld [vmem:[%s4108_s1 + $0xe0] sm:$0xff] }
  0x18   : > { %v3324_v36 = vld [vmem:[%s4108_s1 + $0xd8] sm:$0xff]  ;;  %v3345_v37 = vld [vmem:[%s4108_s1 + $0xd0] sm:$0xff]  ;;  %v3366_v38 = vld [vmem:[%s4108_s1 + $0xc8] sm:$0xff] }
  0x19   : > { %2539 = vmatpush3.xpose.msk.msra.mxu1 %vm214_vm0, %v3071_v7  ;;  %v3387_v39 = vld [vmem:[%s4108_s1 + $0xc0] sm:$0xff]  ;;  %v3408_v40 = vld [vmem:[%s4108_s1 + $0xb8] sm:$0xff]  ;;  %v3429_v41 = vld [vmem:[%s4108_s1 + $0xb0] sm:$0xff] }
  0x1a   : > { %2485 = vmatpush3.xpose.msk.msra.mxu0 %vm214_vm0, %v3064_v6  ;;  %2540 = vmatprep.subr.msk.mxu1 %vm214_vm0, %v3092_v10  ;;  %v643_v42 = vld [vmem:[%s4108_s1 + $0x80] sm:$0xff]  ;;  %v3447_v43 = vld [vmem:[%s4108_s1 + $0xa8] sm:$0xff]  ;;  %v646_v45 = vld [vmem:[%s4108_s1 + $0x98] sm:$0xff] }
  0x1b   : > { %2486 = vmatprep.subr.msk.mxu0 %vm214_vm0, %v3083_v9  ;;  %v647_v44 = vld [vmem:[%s4108_s1 + $0xa0] sm:$0xff]  ;;  %v645_v46 = vld [vmem:[%s4108_s1 + $0x90] sm:$0xff]  ;;  %v644_v47 = vld [vmem:[%s4108_s1 + $0x88] sm:$0xff] }
  0x1c   : > { %v3504_v48 = vld [vmem:[%s4108_s1 + $0x178] sm:$0xff]  ;;  %v3516_v49 = vld [vmem:[%s4108_s1 + $0x170] sm:$0xff]  ;;  %v3533_v50 = vld [vmem:[%s4108_s1 + $0x168] sm:$0xff] }
  0x1d   : > { %2541 = vmatpush3.xpose.msk.msra.mxu1 %vm214_vm0, %v3092_v10  ;;  %v3552_v51 = vld [vmem:[%s4108_s1 + $0x160] sm:$0xff]  ;;  %v3571_v52 = vld [vmem:[%s4108_s1 + $0x158] sm:$0xff]  ;;  %v3592_v53 = vld [vmem:[%s4108_s1 + $0x150] sm:$0xff] }
  0x1e   : > { %2487 = vmatpush3.xpose.msk.msra.mxu0 %vm214_vm0, %v3083_v9  ;;  %2542 = vmatprep.subr.msk.mxu1 %vm214_vm0, %v3108_v12  ;;  %v3613_v54 = vld [vmem:[%s4108_s1 + $0x148] sm:$0xff]  ;;  %v3634_v55 = vld [vmem:[%s4108_s1 + $0x140] sm:$0xff]  ;;  %v3655_v56 = vld [vmem:[%s4108_s1 + $0x138] sm:$0xff] }
  0x1f   : > { %2488 = vmatprep.subr.msk.mxu0 %vm214_vm0, %v3101_v11  ;;  %v3676_v57 = vld [vmem:[%s4108_s1 + $0x130] sm:$0xff]  ;;  %v1039_v58 = vld [vmem:[%s4108_s1 + $0x100] sm:$0xff]  ;;  %v3694_v59 = vld [vmem:[%s4108_s1 + $0x128] sm:$0xff] }
  0x20   : > { %v1043_v60 = vld [vmem:[%s4108_s1 + $0x120] sm:$0xff]  ;;  %v1042_v61 = vld [vmem:[%s4108_s1 + $0x118] sm:$0xff]  ;;  %v1041_v62 = vld [vmem:[%s4108_s1 + $0x110] sm:$0xff] }
  0x21   : > { %2543 = vmatpush3.xpose.msk.msra.mxu1 %vm214_vm0, %v3108_v12  ;;  %v1040_v63 = vld [vmem:[%s4108_s1 + $0x108] sm:$0xff] }
  0x22   : > { %2489 = vmatpush3.xpose.msk.msra.mxu0 %vm214_vm0, %v3101_v11  ;;  %2544 = vmatprep.subr.msk.mxu1 %vm214_vm0, %v3124_v14 }
  0x23   : > { %2490 = vmatprep.subr.msk.mxu0 %vm214_vm0, %v3117_v13 }
  0x25   : > { %2545 = vmatpush3.xpose.msk.msra.mxu1 %vm214_vm0, %v3124_v14 }
  0x26   : > { %2491 = vmatpush3.xpose.msk.msra.mxu0 %vm214_vm0, %v3117_v13  ;;  %2546 = vmatprep.subr.msk.mxu1 %vm214_vm0, %v3140_v16 }
  0x27   : > { %2492 = vmatprep.subr.msk.mxu0 %vm214_vm0, %v3133_v15 }
  0x29   : > { %2547 = vmatpush3.xpose.msk.msra.mxu1 %vm214_vm0, %v3140_v16 }
  0x2a   : > { %2493 = vmatpush3.xpose.msk.msra.mxu0 %vm214_vm0, %v3133_v15  ;;  %2548 = vmatprep.subr.msk.mxu1 %vm214_vm0, %v3156_v18 }
  0x2b   : > { %2494 = vmatprep.subr.msk.mxu0 %vm214_vm0, %v3149_v17 }
  0x2d   : > { %2549 = vmatpush3.xpose.msk.msra.mxu1 %vm214_vm0, %v3156_v18 }
  0x2e   : > { %2495 = vmatpush3.xpose.msk.msra.mxu0 %vm214_vm0, %v3149_v17  ;;  %2550 = vmatprep.subr.msk.mxu1 %vm214_vm0, %v3172_v20 }
  0x2f   : > { %2496 = vmatprep.subr.msk.mxu0 %vm214_vm0, %v3165_v19 }
  0x31   : > { %2551 = vmatpush3.xpose.msk.msra.mxu1 %vm214_vm0, %v3172_v20 }
  0x32   : > { %2497 = vmatpush3.xpose.msk.msra.mxu0 %vm214_vm0, %v3165_v19  ;;  %2552 = vmatprep.subr.msk.mxu1 %vm214_vm0, %v3188_v22 }
  0x33   : > { %2498 = vmatprep.subr.msk.mxu0 %vm214_vm0, %v3181_v21 }
  0x35   : > { %2553 = vmatpush3.xpose.msk.msra.mxu1 %vm214_vm0, %v3188_v22 }
  0x36   : > { %2499 = vmatpush3.xpose.msk.msra.mxu0 %vm214_vm0, %v3181_v21  ;;  %2554 = vmatprep.subr.msk.mxu1 %vm214_vm0, %v3202_v24 }
  0x37   : > { %2500 = vmatprep.subr.msk.mxu0 %vm214_vm0, %v202_v23 }
  0x39   : > { %2555 = vmatpush3.xpose.msk.msra.mxu1 %vm214_vm0, %v3202_v24 }
  0x3a   : > { %2501 = vmatpush3.xpose.msk.msra.mxu0 %vm214_vm0, %v202_v23  ;;  %2556 = vmatprep.subr.msk.mxu1 %vm214_vm0, %v3214_v26 }
  0x3b   : > { %2502 = vmatprep.subr.msk.mxu0 %vm214_vm0, %v201_v25 }
  0x3d   : > { %2557 = vmatpush3.xpose.msk.msra.mxu1 %vm214_vm0, %v3214_v26 }
  0x3e   : > { %2503 = vmatpush3.xpose.msk.msra.mxu0 %vm214_vm0, %v201_v25  ;;  %2558 = vmatprep.subr.msk.mxu1 %vm214_vm0, %v3226_v28 }
  0x3f   : > { %2504 = vmatprep.subr.msk.mxu0 %vm214_vm0, %v200_v27 }
  0x41   : > { %2559 = vmatpush3.xpose.msk.msra.mxu1 %vm214_vm0, %v3226_v28 }
  0x42   : > { %2505 = vmatpush3.xpose.msk.msra.mxu0 %vm214_vm0, %v200_v27  ;;  %2560 = vmatprep.subr.msk.mxu1 %vm214_vm0, %v3238_v30 }
  0x43   : > { %2506 = vmatprep.subr.msk.mxu0 %vm214_vm0, %v199_v29 }
  0x45   : > { %2561 = vmatpush3.xpose.msk.msra.mxu1 %vm214_vm0, %v3238_v30 }
  0x46   : > { %2507 = vmatpush3.xpose.msk.msra.mxu0 %vm214_vm0, %v199_v29  ;;  %2562 = vmatprep.subr.msk.mxu1 %vm214_vm0, %v3247_v31 }
  0x47   : > { %2508 = vmatprep.subr.msk.mxu0 %vm214_vm0, %v3043_v3 }
  0x49   : > { %2563 = vmatpush3.xpose.msk.msra.mxu1 %vm214_vm0, %v3247_v31 }
  0x4a   : > { %2509 = vmatpush3.xpose.msk.msra.mxu0 %vm214_vm0, %v3043_v3  ;;  %2564 = vmatprep.subr.msk.mxu1 %vm214_vm0, %v3076_v8  ;;  %v3799_v3 = vld [vmem:[%s4108_s1 + $0x1e0] sm:$0xff] }
  0x4b   : > { %2590 = vmatprep.subr.msk.mxu0 %vm214_vm0, %v3256_v32 }
  0x4d   : > { %2511 = vmatmul.mubr.msk.f32.vlgmr.msra.gmra.mxu0 %vm214_vm0, %v3247_v31  ;;  %2565 = vmatpush3.xpose.msk.msra.mxu1 %vm214_vm0, %v3076_v8 }
  0x4e   : > { %2591 = vmatpush3.xpose.msk.msra.mxu0 %vm214_vm0, %v3256_v32  ;;  %2513 = vmatprep.mubr.msk.f32.mxu0 %vm214_vm0, %v3238_v30 }
  0x4f   : > { %2592 = vmatprep.subr.msk.mxu0 %vm214_vm0, %v3269_v33  ;;  %2646 = vmatprep.subr.msk.mxu1 %vm214_vm0, %v3048_v4 }
  0x50   : > { %2567 = vmatmul.mubr.msk.f32.vlgmr.msra.gmra.mxu1 %vm214_vm0, %v199_v29  ;;  %v1436_v29 = vld [vmem:[%s4108_s1 + $0x188] sm:$0xff] }
  0x51   : > { %2514 = vmatmul.mubr.msk.f32.gmra.mxu0 %vm214_vm0, %v3226_v28  ;;  %2647 = vmatpush3.xpose.msk.msra.mxu1 %vm214_vm0, %v3048_v4 }
  0x52   : > { %2593 = vmatpush3.xpose.msk.msra.mxu0 %vm214_vm0, %v3269_v33  ;;  %2516 = vmatprep.mubr.msk.f32.mxu0 %vm214_vm0, %v3214_v26 }
  0x53   : > { %2594 = vmatprep.subr.msk.mxu0 %vm214_vm0, %v3286_v34  ;;  %2569 = vmatprep.mubr.msk.f32.mxu1 %vm214_vm0, %v200_v27  ;;  %v1437_v27 = vld [vmem:[%s4108_s1 + $0x190] sm:$0xff] }
  0x54   : > { %2648 = vmatprep.subr.msk.mxu1 %vm214_vm0, %v3051_v5  ;;  %2570 = vmatmul.mubr.msk.f32.gmra.mxu1 %vm214_vm0, %v201_v25  ;;  %v1438_v25 = vld [vmem:[%s4108_s1 + $0x198] sm:$0xff] }
  0x55   : > { %2517 = vmatmul.mubr.msk.f32.gmra.mxu0 %vm214_vm0, %v3202_v24  ;;  %2649 = vmatpush3.xpose.msk.msra.mxu1 %vm214_vm0, %v3051_v5 }
  0x56   : > { %2595 = vmatpush3.xpose.msk.msra.mxu0 %vm214_vm0, %v3286_v34  ;;  %2519 = vmatprep.mubr.msk.f32.mxu0 %vm214_vm0, %v3188_v22 }
  0x57   : > { %2596 = vmatprep.subr.msk.mxu0 %vm214_vm0, %v3305_v35  ;;  %2572 = vmatprep.mubr.msk.f32.mxu1 %vm214_vm0, %v202_v23  ;;  %v1439_v23 = vld [vmem:[%s4108_s1 + $0x1a0] sm:$0xff] }
  0x58   : > { %2650 = vmatprep.subr.msk.mxu1 %vm214_vm0, %v3071_v7  ;;  %2573 = vmatmul.mubr.msk.f32.gmra.mxu1 %vm214_vm0, %v3181_v21  ;;  %v3941_v21 = vld [vmem:[%s4108_s1 + $0x1a8] sm:$0xff] }
  0x59   : > { %2520 = vmatmul.mubr.msk.f32.gmra.mxu0 %vm214_vm0, %v3172_v20  ;;  %2651 = vmatpush3.xpose.msk.msra.mxu1 %vm214_vm0, %v3071_v7 }
  0x5a   : > { %2597 = vmatpush3.xpose.msk.msra.mxu0 %vm214_vm0, %v3305_v35  ;;  %2522 = vmatprep.mubr.msk.f32.mxu0 %vm214_vm0, %v3156_v18 }
  0x5b   : > { %2598 = vmatprep.subr.msk.mxu0 %vm214_vm0, %v3324_v36  ;;  %2575 = vmatprep.mubr.msk.f32.mxu1 %vm214_vm0, %v3165_v19  ;;  %v1435_v19 = vld [vmem:[%s4108_s1 + $0x180] sm:$0xff] }
  0x5c   : > { %2652 = vmatprep.subr.msk.mxu1 %vm214_vm0, %v3092_v10  ;;  %2576 = vmatmul.mubr.msk.f32.gmra.mxu1 %vm214_vm0, %v3149_v17  ;;  %v3923_v17 = vld [vmem:[%s4108_s1 + $0x1b0] sm:$0xff] }
  0x5d   : > { %2523 = vmatmul.mubr.msk.f32.gmra.mxu0 %vm214_vm0, %v3140_v16  ;;  %2653 = vmatpush3.xpose.msk.msra.mxu1 %vm214_vm0, %v3092_v10 }
  0x5e   : > { %2599 = vmatpush3.xpose.msk.msra.mxu0 %vm214_vm0, %v3324_v36  ;;  %2525 = vmatprep.mubr.msk.f32.mxu0 %vm214_vm0, %v3124_v14 }
  0x5f   : > { %2600 = vmatprep.subr.msk.mxu0 %vm214_vm0, %v3345_v37  ;;  %2578 = vmatprep.mubr.msk.f32.mxu1 %vm214_vm0, %v3133_v15  ;;  %v3902_v15 = vld [vmem:[%s4108_s1 + $0x1b8] sm:$0xff] }
  0x60   : > { %2654 = vmatprep.subr.msk.mxu1 %vm214_vm0, %v3108_v12  ;;  %2579 = vmatmul.mubr.msk.f32.gmra.mxu1 %vm214_vm0, %v3117_v13  ;;  %v3881_v13 = vld [vmem:[%s4108_s1 + $0x1c0] sm:$0xff] }
  0x61   : > { %2526 = vmatmul.mubr.msk.f32.gmra.mxu0 %vm214_vm0, %v3108_v12  ;;  %2655 = vmatpush3.xpose.msk.msra.mxu1 %vm214_vm0, %v3108_v12 }
  0x62   : > { %2601 = vmatpush3.xpose.msk.msra.mxu0 %vm214_vm0, %v3345_v37  ;;  %2528 = vmatprep.mubr.msk.f32.mxu0 %vm214_vm0, %v3092_v10 }
  0x63   : > { %2602 = vmatprep.subr.msk.mxu0 %vm214_vm0, %v3366_v38  ;;  %2581 = vmatprep.mubr.msk.f32.mxu1 %vm214_vm0, %v3101_v11  ;;  %v3860_v11 = vld [vmem:[%s4108_s1 + $0x1c8] sm:$0xff] }
  0x64   : > { %2656 = vmatprep.subr.msk.mxu1 %vm214_vm0, %v3124_v14  ;;  %2582 = vmatmul.mubr.msk.f32.gmra.mxu1 %vm214_vm0, %v3083_v9  ;;  %v3839_v9 = vld [vmem:[%s4108_s1 + $0x1d0] sm:$0xff] }
  0x65   : > { %2529 = vmatmul.mubr.msk.f32.gmra.mxu0 %vm214_vm0, %v3071_v7  ;;  %2657 = vmatpush3.xpose.msk.msra.mxu1 %vm214_vm0, %v3124_v14 }
  0x66   : > { %2603 = vmatpush3.xpose.msk.msra.mxu0 %vm214_vm0, %v3366_v38  ;;  %2531 = vmatprep.mubr.msk.f32.mxu0 %vm214_vm0, %v3051_v5 }
  0x67   : > { %2604 = vmatprep.subr.msk.mxu0 %vm214_vm0, %v3387_v39  ;;  %2584 = vmatprep.mubr.msk.f32.mxu1 %vm214_vm0, %v3064_v6  ;;  %v3818_v6 = vld [vmem:[%s4108_s1 + $0x1d8] sm:$0xff] }
  0x68   : > { %2658 = vmatprep.subr.msk.mxu1 %vm214_vm0, %v3140_v16  ;;  %2585 = vmatmul.mubr.msk.f32.gmra.mxu1 %vm214_vm0, %v3033_v2  ;;  %v3780_v2 = vld [vmem:[%s4108_s1 + $0x1e8] sm:$0xff] }
  0x69   : > { %2532 = vmatmul.mubr.msk.f32.gmra.mxu0 %vm214_vm0, %v3048_v4  ;;  %2659 = vmatpush3.xpose.msk.msra.mxu1 %vm214_vm0, %v3140_v16 }
  0x6a   : > { %2605 = vmatpush3.xpose.msk.msra.mxu0 %vm214_vm0, %v3387_v39  ;;  %2622 = vmatprep.mubr.msk.f32.mxu0 %vm214_vm0, %v3076_v8 }
  0x6b   : > { %2606 = vmatprep.subr.msk.mxu0 %vm214_vm0, %v3408_v40  ;;  %2587 = vmatprep.mubr.msk.f32.mxu1 %vm214_vm0, %v3019_v1  ;;  %v3763_v1 = vld [vmem:[%s4108_s1 + $0x1f0] sm:$0xff] }
  0x6c   : > { %2660 = vmatprep.subr.msk.mxu1 %vm214_vm0, %v3156_v18  ;;  %2588 = vmatmul.mubr.msk.f32.gmra.mxu1 %vm214_vm0, %v3014_v0  ;;  %v3751_v0 = vld [vmem:[%s4108_s1 + $0x1f8] sm:$0xff] }
  0x6d   : > { %2661 = vmatpush3.xpose.msk.msra.mxu1 %vm214_vm0, %v3156_v18  ;;  %2678 = vmatprep.mubr.msk.f32.mxu1 %vm214_vm0, %v643_v42 }
  0x6e   : > { %2607 = vmatpush3.xpose.msk.msra.mxu0 %vm214_vm0, %v3408_v40  ;;  %2662 = vmatprep.subr.msk.mxu1 %vm214_vm0, %v3172_v20 }
  0x6f   : > { %2608 = vmatprep.subr.msk.mxu0 %vm214_vm0, %v3429_v41 }
  0x71   : > { %2663 = vmatpush3.xpose.msk.msra.mxu1 %vm214_vm0, %v3172_v20 }
  0x72   : > { %2609 = vmatpush3.xpose.msk.msra.mxu0 %vm214_vm0, %v3429_v41  ;;  %2664 = vmatprep.subr.msk.mxu1 %vm214_vm0, %v3188_v22 }
  0x73   : > { %2610 = vmatprep.subr.msk.mxu0 %vm214_vm0, %v3447_v43 }
  0x75   : > { %2665 = vmatpush3.xpose.msk.msra.mxu1 %vm214_vm0, %v3188_v22 }
  0x76   : > { %2611 = vmatpush3.xpose.msk.msra.mxu0 %vm214_vm0, %v3447_v43  ;;  %2666 = vmatprep.subr.msk.mxu1 %vm214_vm0, %v3202_v24 }
  0x77   : > { %2612 = vmatprep.subr.msk.mxu0 %vm214_vm0, %v647_v44 }
  0x79   : > { %2667 = vmatpush3.xpose.msk.msra.mxu1 %vm214_vm0, %v3202_v24 }
  0x7a   : > { %2613 = vmatpush3.xpose.msk.msra.mxu0 %vm214_vm0, %v647_v44  ;;  %2668 = vmatprep.subr.msk.mxu1 %vm214_vm0, %v3214_v26 }
  0x7b   : > { %2614 = vmatprep.subr.msk.mxu0 %vm214_vm0, %v646_v45 }
  0x7d   : > { %2669 = vmatpush3.xpose.msk.msra.mxu1 %vm214_vm0, %v3214_v26 }
  0x7e   : > { %2615 = vmatpush3.xpose.msk.msra.mxu0 %vm214_vm0, %v646_v45  ;;  %2670 = vmatprep.subr.msk.mxu1 %vm214_vm0, %v3226_v28 }
  0x7f   : > { %2616 = vmatprep.subr.msk.mxu0 %vm214_vm0, %v645_v46 }
  0x81   : > { %2671 = vmatpush3.xpose.msk.msra.mxu1 %vm214_vm0, %v3226_v28 }
  0x82   : > { %2617 = vmatpush3.xpose.msk.msra.mxu0 %vm214_vm0, %v645_v46  ;;  %2672 = vmatprep.subr.msk.mxu1 %vm214_vm0, %v3238_v30 }
  0x83   : > { %2618 = vmatprep.subr.msk.mxu0 %vm214_vm0, %v644_v47 }
  0x85   : > { %2673 = vmatpush3.xpose.msk.msra.mxu1 %vm214_vm0, %v3238_v30 }
  0x86   : > { %2619 = vmatpush3.xpose.msk.msra.mxu0 %vm214_vm0, %v644_v47  ;;  %2674 = vmatprep.subr.msk.mxu1 %vm214_vm0, %v3247_v31 }
  0x87   : > { %2620 = vmatprep.subr.msk.mxu0 %vm214_vm0, %v643_v42 }
  0x89   : > { %2675 = vmatpush3.xpose.msk.msra.mxu1 %vm214_vm0, %v3247_v31 }
  0x8a   : > { %2621 = vmatpush3.xpose.msk.msra.mxu0 %vm214_vm0, %v643_v42  ;;  %2676 = vmatprep.subr.msk.mxu1 %vm214_vm0, %v3076_v8 }
  0x8b   : > { %2702 = vmatprep.subr.msk.mxu0 %vm214_vm0, %v3504_v48 }
  0x8d   : > { %2623 = vmatmul.mubr.msk.f32.vlgmr.msra.gmra.mxu0 %vm214_vm0, %v3247_v31  ;;  %2677 = vmatpush3.xpose.msk.msra.mxu1 %vm214_vm0, %v3076_v8 }
  0x8e   : > { %2703 = vmatpush3.xpose.msk.msra.mxu0 %vm214_vm0, %v3504_v48  ;;  %2625 = vmatprep.mubr.msk.f32.mxu0 %vm214_vm0, %v3238_v30 }
  0x8f   : > { %2704 = vmatprep.subr.msk.mxu0 %vm214_vm0, %v3516_v49  ;;  %2758 = vmatprep.subr.msk.mxu1 %vm214_vm0, %v3048_v4 }
  0x90   : > { %2679 = vmatmul.mubr.msk.f32.vlgmr.msra.gmra.mxu1 %vm214_vm0, %v644_v47 }
  0x91   : > { %2626 = vmatmul.mubr.msk.f32.gmra.mxu0 %vm214_vm0, %v3226_v28  ;;  %2759 = vmatpush3.xpose.msk.msra.mxu1 %vm214_vm0, %v3048_v4 }
  0x92   : > { %2705 = vmatpush3.xpose.msk.msra.mxu0 %vm214_vm0, %v3516_v49  ;;  %2628 = vmatprep.mubr.msk.f32.mxu0 %vm214_vm0, %v3214_v26 }
  0x93   : > { %2706 = vmatprep.subr.msk.mxu0 %vm214_vm0, %v3533_v50  ;;  %2681 = vmatprep.mubr.msk.f32.mxu1 %vm214_vm0, %v645_v46 }
  0x94   : > { %2760 = vmatprep.subr.msk.mxu1 %vm214_vm0, %v3051_v5  ;;  %2682 = vmatmul.mubr.msk.f32.gmra.mxu1 %vm214_vm0, %v646_v45 }
  0x95   : > { %2629 = vmatmul.mubr.msk.f32.gmra.mxu0 %vm214_vm0, %v3202_v24  ;;  %2761 = vmatpush3.xpose.msk.msra.mxu1 %vm214_vm0, %v3051_v5 }
  0x96   : > { %2707 = vmatpush3.xpose.msk.msra.mxu0 %vm214_vm0, %v3533_v50  ;;  %2631 = vmatprep.mubr.msk.f32.mxu0 %vm214_vm0, %v3188_v22 }
  0x97   : > { %2708 = vmatprep.subr.msk.mxu0 %vm214_vm0, %v3552_v51  ;;  %2684 = vmatprep.mubr.msk.f32.mxu1 %vm214_vm0, %v647_v44 }
  0x98   : > { %2762 = vmatprep.subr.msk.mxu1 %vm214_vm0, %v3071_v7  ;;  %2685 = vmatmul.mubr.msk.f32.gmra.mxu1 %vm214_vm0, %v3447_v43 }
  0x99   : > { %2632 = vmatmul.mubr.msk.f32.gmra.mxu0 %vm214_vm0, %v3172_v20  ;;  %2763 = vmatpush3.xpose.msk.msra.mxu1 %vm214_vm0, %v3071_v7 }
  0x9a   : > { %2709 = vmatpush3.xpose.msk.msra.mxu0 %vm214_vm0, %v3552_v51  ;;  %2634 = vmatprep.mubr.msk.f32.mxu0 %vm214_vm0, %v3156_v18 }
  0x9b   : > { %2710 = vmatprep.subr.msk.mxu0 %vm214_vm0, %v3571_v52  ;;  %2687 = vmatprep.mubr.msk.f32.mxu1 %vm214_vm0, %v3429_v41 }
  0x9c   : > { %2764 = vmatprep.subr.msk.mxu1 %vm214_vm0, %v3092_v10  ;;  %2688 = vmatmul.mubr.msk.f32.gmra.mxu1 %vm214_vm0, %v3408_v40 }
  0x9d   : > { %2635 = vmatmul.mubr.msk.f32.gmra.mxu0 %vm214_vm0, %v3140_v16  ;;  %2765 = vmatpush3.xpose.msk.msra.mxu1 %vm214_vm0, %v3092_v10 }
  0x9e   : > { %2711 = vmatpush3.xpose.msk.msra.mxu0 %vm214_vm0, %v3571_v52  ;;  %2637 = vmatprep.mubr.msk.f32.mxu0 %vm214_vm0, %v3124_v14 }
  0x9f   : > { %2712 = vmatprep.subr.msk.mxu0 %vm214_vm0, %v3592_v53  ;;  %2690 = vmatprep.mubr.msk.f32.mxu1 %vm214_vm0, %v3387_v39 }
  0xa0   : > { %2766 = vmatprep.subr.msk.mxu1 %vm214_vm0, %v3108_v12  ;;  %2691 = vmatmul.mubr.msk.f32.gmra.mxu1 %vm214_vm0, %v3366_v38 }
  0xa1   : > { %2638 = vmatmul.mubr.msk.f32.gmra.mxu0 %vm214_vm0, %v3108_v12  ;;  %2767 = vmatpush3.xpose.msk.msra.mxu1 %vm214_vm0, %v3108_v12 }
  0xa2   : > { %2713 = vmatpush3.xpose.msk.msra.mxu0 %vm214_vm0, %v3592_v53  ;;  %2640 = vmatprep.mubr.msk.f32.mxu0 %vm214_vm0, %v3092_v10 }
  0xa3   : > { %2714 = vmatprep.subr.msk.mxu0 %vm214_vm0, %v3613_v54  ;;  %2693 = vmatprep.mubr.msk.f32.mxu1 %vm214_vm0, %v3345_v37 }
  0xa4   : > { %2768 = vmatprep.subr.msk.mxu1 %vm214_vm0, %v3124_v14  ;;  %2694 = vmatmul.mubr.msk.f32.gmra.mxu1 %vm214_vm0, %v3324_v36 }
  0xa5   : > { %2641 = vmatmul.mubr.msk.f32.gmra.mxu0 %vm214_vm0, %v3071_v7  ;;  %2769 = vmatpush3.xpose.msk.msra.mxu1 %vm214_vm0, %v3124_v14 }
  0xa6   : > { %2715 = vmatpush3.xpose.msk.msra.mxu0 %vm214_vm0, %v3613_v54  ;;  %2643 = vmatprep.mubr.msk.f32.mxu0 %vm214_vm0, %v3051_v5 }
  0xa7   : > { %2716 = vmatprep.subr.msk.mxu0 %vm214_vm0, %v3634_v55  ;;  %2696 = vmatprep.mubr.msk.f32.mxu1 %vm214_vm0, %v3305_v35 }
  0xa8   : > { %2770 = vmatprep.subr.msk.mxu1 %vm214_vm0, %v3140_v16  ;;  %2697 = vmatmul.mubr.msk.f32.gmra.mxu1 %vm214_vm0, %v3286_v34 }
  0xa9   : > { %2644 = vmatmul.mubr.msk.f32.gmra.mxu0 %vm214_vm0, %v3048_v4  ;;  %2771 = vmatpush3.xpose.msk.msra.mxu1 %vm214_vm0, %v3140_v16 }
  0xaa   : > { %2717 = vmatpush3.xpose.msk.msra.mxu0 %vm214_vm0, %v3634_v55  ;;  %2734 = vmatprep.mubr.msk.f32.mxu0 %vm214_vm0, %v3076_v8 }
  0xab   : > { %2718 = vmatprep.subr.msk.mxu0 %vm214_vm0, %v3655_v56  ;;  %2699 = vmatprep.mubr.msk.f32.mxu1 %vm214_vm0, %v3269_v33 }
  0xac   : > { %2772 = vmatprep.subr.msk.mxu1 %vm214_vm0, %v3156_v18  ;;  %2700 = vmatmul.mubr.msk.f32.gmra.mxu1 %vm214_vm0, %v3256_v32 }
  0xad   : > { %2773 = vmatpush3.xpose.msk.msra.mxu1 %vm214_vm0, %v3156_v18  ;;  %2790 = vmatprep.mubr.msk.f32.mxu1 %vm214_vm0, %v1039_v58 }
  0xae   : > { %2719 = vmatpush3.xpose.msk.msra.mxu0 %vm214_vm0, %v3655_v56  ;;  %2774 = vmatprep.subr.msk.mxu1 %vm214_vm0, %v3172_v20 }
  0xaf   : > { %2720 = vmatprep.subr.msk.mxu0 %vm214_vm0, %v3676_v57 }
  0xb1   : > { %2775 = vmatpush3.xpose.msk.msra.mxu1 %vm214_vm0, %v3172_v20 }
  0xb2   : > { %2721 = vmatpush3.xpose.msk.msra.mxu0 %vm214_vm0, %v3676_v57  ;;  %2776 = vmatprep.subr.msk.mxu1 %vm214_vm0, %v3188_v22 }
  0xb3   : > { %2722 = vmatprep.subr.msk.mxu0 %vm214_vm0, %v3694_v59 }
  0xb5   : > { %2777 = vmatpush3.xpose.msk.msra.mxu1 %vm214_vm0, %v3188_v22 }
  0xb6   : > { %2723 = vmatpush3.xpose.msk.msra.mxu0 %vm214_vm0, %v3694_v59  ;;  %2778 = vmatprep.subr.msk.mxu1 %vm214_vm0, %v3202_v24 }
  0xb7   : > { %2724 = vmatprep.subr.msk.mxu0 %vm214_vm0, %v1043_v60 }
  0xb9   : > { %2779 = vmatpush3.xpose.msk.msra.mxu1 %vm214_vm0, %v3202_v24 }
  0xba   : > { %2725 = vmatpush3.xpose.msk.msra.mxu0 %vm214_vm0, %v1043_v60  ;;  %2780 = vmatprep.subr.msk.mxu1 %vm214_vm0, %v3214_v26 }
  0xbb   : > { %2726 = vmatprep.subr.msk.mxu0 %vm214_vm0, %v1042_v61 }
  0xbd   : > { %2781 = vmatpush3.xpose.msk.msra.mxu1 %vm214_vm0, %v3214_v26 }
  0xbe   : > { %2727 = vmatpush3.xpose.msk.msra.mxu0 %vm214_vm0, %v1042_v61  ;;  %2782 = vmatprep.subr.msk.mxu1 %vm214_vm0, %v3226_v28 }
  0xbf   : > { %2728 = vmatprep.subr.msk.mxu0 %vm214_vm0, %v1041_v62 }
  0xc1   : > { %2783 = vmatpush3.xpose.msk.msra.mxu1 %vm214_vm0, %v3226_v28 }
  0xc2   : > { %2729 = vmatpush3.xpose.msk.msra.mxu0 %vm214_vm0, %v1041_v62  ;;  %2784 = vmatprep.subr.msk.mxu1 %vm214_vm0, %v3238_v30 }
  0xc3   : > { %2730 = vmatprep.subr.msk.mxu0 %vm214_vm0, %v1040_v63 }
  0xc5   : > { %2785 = vmatpush3.xpose.msk.msra.mxu1 %vm214_vm0, %v3238_v30 }
  0xc6   : > { %2731 = vmatpush3.xpose.msk.msra.mxu0 %vm214_vm0, %v1040_v63  ;;  %2786 = vmatprep.subr.msk.mxu1 %vm214_vm0, %v3247_v31 }
  0xc7   : > { %2732 = vmatprep.subr.msk.mxu0 %vm214_vm0, %v1039_v58 }
  0xc9   : > { %2787 = vmatpush3.xpose.msk.msra.mxu1 %vm214_vm0, %v3247_v31 }
  0xca   : > { %2733 = vmatpush3.xpose.msk.msra.mxu0 %vm214_vm0, %v1039_v58  ;;  %2788 = vmatprep.subr.msk.mxu1 %vm214_vm0, %v3076_v8 }
  0xcb   : > { %2814 = vmatprep.subr.msk.mxu0 %vm214_vm0, %v3751_v0 }
  0xcd   : > { %2735 = vmatmul.mubr.msk.f32.vlgmr.msra.gmra.mxu0 %vm214_vm0, %v3247_v31  ;;  %2789 = vmatpush3.xpose.msk.msra.mxu1 %vm214_vm0, %v3076_v8 }
  0xce   : > { %2815 = vmatpush3.xpose.msk.msra.mxu0 %vm214_vm0, %v3751_v0  ;;  %2737 = vmatprep.mubr.msk.f32.mxu0 %vm214_vm0, %v3238_v30 }
  0xcf   : > { %2816 = vmatprep.subr.msk.mxu0 %vm214_vm0, %v3763_v1  ;;  %2870 = vmatprep.subr.msk.mxu1 %vm214_vm0, %v3048_v4 }
  0xd0   : > { %2791 = vmatmul.mubr.msk.f32.vlgmr.msra.gmra.mxu1 %vm214_vm0, %v1040_v63 }
  0xd1   : > { %2738 = vmatmul.mubr.msk.f32.gmra.mxu0 %vm214_vm0, %v3226_v28  ;;  %2871 = vmatpush3.xpose.msk.msra.mxu1 %vm214_vm0, %v3048_v4 }
  0xd2   : > { %2817 = vmatpush3.xpose.msk.msra.mxu0 %vm214_vm0, %v3763_v1  ;;  %2740 = vmatprep.mubr.msk.f32.mxu0 %vm214_vm0, %v3214_v26 }
  0xd3   : > { %2818 = vmatprep.subr.msk.mxu0 %vm214_vm0, %v3780_v2  ;;  %2793 = vmatprep.mubr.msk.f32.mxu1 %vm214_vm0, %v1041_v62 }
  0xd4   : > { %2872 = vmatprep.subr.msk.mxu1 %vm214_vm0, %v3051_v5  ;;  %2794 = vmatmul.mubr.msk.f32.gmra.mxu1 %vm214_vm0, %v1042_v61 }
  0xd5   : > { %2741 = vmatmul.mubr.msk.f32.gmra.mxu0 %vm214_vm0, %v3202_v24  ;;  %2873 = vmatpush3.xpose.msk.msra.mxu1 %vm214_vm0, %v3051_v5 }
  0xd6   : > { %2819 = vmatpush3.xpose.msk.msra.mxu0 %vm214_vm0, %v3780_v2  ;;  %2743 = vmatprep.mubr.msk.f32.mxu0 %vm214_vm0, %v3188_v22 }
  0xd7   : > { %2820 = vmatprep.subr.msk.mxu0 %vm214_vm0, %v3799_v3  ;;  %2796 = vmatprep.mubr.msk.f32.mxu1 %vm214_vm0, %v1043_v60 }
  0xd8   : > { %2874 = vmatprep.subr.msk.mxu1 %vm214_vm0, %v3071_v7  ;;  %2797 = vmatmul.mubr.msk.f32.gmra.mxu1 %vm214_vm0, %v3694_v59 }
  0xd9   : > { %2744 = vmatmul.mubr.msk.f32.gmra.mxu0 %vm214_vm0, %v3172_v20  ;;  %2875 = vmatpush3.xpose.msk.msra.mxu1 %vm214_vm0, %v3071_v7 }
  0xda   : > { %2821 = vmatpush3.xpose.msk.msra.mxu0 %vm214_vm0, %v3799_v3  ;;  %2746 = vmatprep.mubr.msk.f32.mxu0 %vm214_vm0, %v3156_v18 }
  0xdb   : > { %2822 = vmatprep.subr.msk.mxu0 %vm214_vm0, %v3818_v6  ;;  %2799 = vmatprep.mubr.msk.f32.mxu1 %vm214_vm0, %v3676_v57 }
  0xdc   : > { %2876 = vmatprep.subr.msk.mxu1 %vm214_vm0, %v3092_v10  ;;  %2800 = vmatmul.mubr.msk.f32.gmra.mxu1 %vm214_vm0, %v3655_v56 }
  0xdd   : > { %2747 = vmatmul.mubr.msk.f32.gmra.mxu0 %vm214_vm0, %v3140_v16  ;;  %2877 = vmatpush3.xpose.msk.msra.mxu1 %vm214_vm0, %v3092_v10 }
  0xde   : > { %2823 = vmatpush3.xpose.msk.msra.mxu0 %vm214_vm0, %v3818_v6  ;;  %2749 = vmatprep.mubr.msk.f32.mxu0 %vm214_vm0, %v3124_v14 }
  0xdf   : > { %2824 = vmatprep.subr.msk.mxu0 %vm214_vm0, %v3839_v9  ;;  %2802 = vmatprep.mubr.msk.f32.mxu1 %vm214_vm0, %v3634_v55 }
  0xe0   : > { %2878 = vmatprep.subr.msk.mxu1 %vm214_vm0, %v3108_v12  ;;  %2803 = vmatmul.mubr.msk.f32.gmra.mxu1 %vm214_vm0, %v3613_v54 }
  0xe1   : > { %2750 = vmatmul.mubr.msk.f32.gmra.mxu0 %vm214_vm0, %v3108_v12  ;;  %2879 = vmatpush3.xpose.msk.msra.mxu1 %vm214_vm0, %v3108_v12 }
  0xe2   : > { %2825 = vmatpush3.xpose.msk.msra.mxu0 %vm214_vm0, %v3839_v9  ;;  %2752 = vmatprep.mubr.msk.f32.mxu0 %vm214_vm0, %v3092_v10 }
  0xe3   : > { %2826 = vmatprep.subr.msk.mxu0 %vm214_vm0, %v3860_v11  ;;  %2805 = vmatprep.mubr.msk.f32.mxu1 %vm214_vm0, %v3592_v53 }
  0xe4   : > { %2880 = vmatprep.subr.msk.mxu1 %vm214_vm0, %v3124_v14  ;;  %2806 = vmatmul.mubr.msk.f32.gmra.mxu1 %vm214_vm0, %v3571_v52 }
  0xe5   : > { %2753 = vmatmul.mubr.msk.f32.gmra.mxu0 %vm214_vm0, %v3071_v7  ;;  %2881 = vmatpush3.xpose.msk.msra.mxu1 %vm214_vm0, %v3124_v14 }
  0xe6   : > { %2827 = vmatpush3.xpose.msk.msra.mxu0 %vm214_vm0, %v3860_v11  ;;  %2755 = vmatprep.mubr.msk.f32.mxu0 %vm214_vm0, %v3051_v5 }
  0xe7   : > { %2828 = vmatprep.subr.msk.mxu0 %vm214_vm0, %v3881_v13  ;;  %2808 = vmatprep.mubr.msk.f32.mxu1 %vm214_vm0, %v3552_v51 }
  0xe8   : > { %2882 = vmatprep.subr.msk.mxu1 %vm214_vm0, %v3140_v16  ;;  %2809 = vmatmul.mubr.msk.f32.gmra.mxu1 %vm214_vm0, %v3533_v50 }
  0xe9   : > { %2756 = vmatmul.mubr.msk.f32.gmra.mxu0 %vm214_vm0, %v3048_v4  ;;  %2883 = vmatpush3.xpose.msk.msra.mxu1 %vm214_vm0, %v3140_v16 }
  0xea   : > { %2829 = vmatpush3.xpose.msk.msra.mxu0 %vm214_vm0, %v3881_v13  ;;  %2846 = vmatprep.mubr.msk.f32.mxu0 %vm214_vm0, %v3076_v8 }
  0xeb   : > { %2830 = vmatprep.subr.msk.mxu0 %vm214_vm0, %v3902_v15  ;;  %2811 = vmatprep.mubr.msk.f32.mxu1 %vm214_vm0, %v3516_v49 }
  0xec   : > { %2884 = vmatprep.subr.msk.mxu1 %vm214_vm0, %v3156_v18  ;;  %2812 = vmatmul.mubr.msk.f32.gmra.mxu1 %vm214_vm0, %v3504_v48 }
  0xed   : > { %2885 = vmatpush3.xpose.msk.msra.mxu1 %vm214_vm0, %v3156_v18  ;;  %2902 = vmatprep.mubr.msk.f32.mxu1 %vm214_vm0, %v1435_v19 }
  0xee   : > { %2831 = vmatpush3.xpose.msk.msra.mxu0 %vm214_vm0, %v3902_v15  ;;  %2886 = vmatprep.subr.msk.mxu1 %vm214_vm0, %v3172_v20 }
  0xef   : > { %2832 = vmatprep.subr.msk.mxu0 %vm214_vm0, %v3923_v17 }
  0xf1   : > { %2887 = vmatpush3.xpose.msk.msra.mxu1 %vm214_vm0, %v3172_v20 }
  0xf2   : > { %2833 = vmatpush3.xpose.msk.msra.mxu0 %vm214_vm0, %v3923_v17  ;;  %2888 = vmatprep.subr.msk.mxu1 %vm214_vm0, %v3188_v22 }
  0xf3   : > { %2834 = vmatprep.subr.msk.mxu0 %vm214_vm0, %v3941_v21 }
  0xf5   : > { %2889 = vmatpush3.xpose.msk.msra.mxu1 %vm214_vm0, %v3188_v22 }
  0xf6   : > { %2835 = vmatpush3.xpose.msk.msra.mxu0 %vm214_vm0, %v3941_v21  ;;  %2890 = vmatprep.subr.msk.mxu1 %vm214_vm0, %v3202_v24 }
  0xf7   : > { %2836 = vmatprep.subr.msk.mxu0 %vm214_vm0, %v1439_v23 }
  0xf9   : > { %2891 = vmatpush3.xpose.msk.msra.mxu1 %vm214_vm0, %v3202_v24 }
  0xfa   : > { %2837 = vmatpush3.xpose.msk.msra.mxu0 %vm214_vm0, %v1439_v23  ;;  %2892 = vmatprep.subr.msk.mxu1 %vm214_vm0, %v3214_v26 }
  0xfb   : > { %2838 = vmatprep.subr.msk.mxu0 %vm214_vm0, %v1438_v25 }
  0xfd   : > { %2893 = vmatpush3.xpose.msk.msra.mxu1 %vm214_vm0, %v3214_v26 }
  0xfe   : > { %2839 = vmatpush3.xpose.msk.msra.mxu0 %vm214_vm0, %v1438_v25  ;;  %2894 = vmatprep.subr.msk.mxu1 %vm214_vm0, %v3226_v28 }
  0xff   : > { %2840 = vmatprep.subr.msk.mxu0 %vm214_vm0, %v1437_v27 }
 0x101   : > { %2895 = vmatpush3.xpose.msk.msra.mxu1 %vm214_vm0, %v3226_v28 }
 0x102   : > { %2841 = vmatpush3.xpose.msk.msra.mxu0 %vm214_vm0, %v1437_v27  ;;  %2896 = vmatprep.subr.msk.mxu1 %vm214_vm0, %v3238_v30 }
 0x103   : > { %2842 = vmatprep.subr.msk.mxu0 %vm214_vm0, %v1436_v29 }
 0x105   : > { %2897 = vmatpush3.xpose.msk.msra.mxu1 %vm214_vm0, %v3238_v30 }
 0x106   : > { %2843 = vmatpush3.xpose.msk.msra.mxu0 %vm214_vm0, %v1436_v29  ;;  %2898 = vmatprep.subr.msk.mxu1 %vm214_vm0, %v3247_v31 }
 0x107   : > { %2844 = vmatprep.subr.msk.mxu0 %vm214_vm0, %v1435_v19 }
 0x109   : > { %2899 = vmatpush3.xpose.msk.msra.mxu1 %vm214_vm0, %v3247_v31 }
 0x10a   : > { %2845 = vmatpush3.xpose.msk.msra.mxu0 %vm214_vm0, %v1435_v19  ;;  %2900 = vmatprep.subr.msk.mxu1 %vm214_vm0, %v3076_v8 }
 0x10d   : > { %v2512_v32 = vpop.f32.mrf.mxu0  ;;  %2847 = vmatmul.mubr.msk.f32.vlgmr.msra.gmra.mxu0 %vm214_vm0, %v3247_v31  ;;  %2901 = vmatpush3.xpose.msk.msra.mxu1 %vm214_vm0, %v3076_v8 }
 0x10e   : > { %2849 = vmatprep.mubr.msk.f32.mxu0 %vm214_vm0, %v3238_v30 }
 0x10f   : > { %v377_v33 = vpop.f32.mrf.mxu0 }
 0x110   : > { %v2568_v36 = vpop.f32.mrf.mxu1  ;;  %2903 = vmatmul.mubr.msk.f32.vlgmr.msra.gmra.mxu1 %vm214_vm0, %v1436_v29 }
 0x111   : > { %v2515_v34 = vpop.f32.mrf.mxu0  ;;  %2850 = vmatmul.mubr.msk.f32.gmra.mxu0 %vm214_vm0, %v3226_v28  ;;  %2905 = vmatprep.mubr.msk.f32.mxu1 %vm214_vm0, %v1437_v27 }
 0x112   : > { %2852 = vmatprep.mubr.msk.f32.mxu0 %vm214_vm0, %v3214_v26  ;;  %v522_v37 = vpop.f32.mrf.mxu1 }
 0x113   : > { %v387_v35 = vpop.f32.mrf.mxu0 }
 0x114   : > { %v2571_v28 = vpop.f32.mrf.mxu1  ;;  %2906 = vmatmul.mubr.msk.f32.gmra.mxu1 %vm214_vm0, %v1438_v25 }
 0x115   : > { %v2518_v31 = vpop.f32.mrf.mxu0  ;;  %2853 = vmatmul.mubr.msk.f32.gmra.mxu0 %vm214_vm0, %v3202_v24  ;;  %2908 = vmatprep.mubr.msk.f32.mxu1 %vm214_vm0, %v1439_v23 }
 0x116   : > { %v602_v30 = vmin.f32 %v2512_v32, %v2518_v31  ;;  %2855 = vmatprep.mubr.msk.f32.mxu0 %vm214_vm0, %v3188_v22  ;;  %v532_v39 = vpop.f32.mrf.mxu1 }
 0x117   : > { %v397_v8 = vpop.f32.mrf.mxu0 }
 0x118   : > { %v601_v26 = vmin.f32 %v377_v33, %v397_v8  ;;  %v2574_v41 = vpop.f32.mrf.mxu1  ;;  %2909 = vmatmul.mubr.msk.f32.gmra.mxu1 %vm214_vm0, %v3941_v21 }
 0x119   : > { %v2521_v38 = vpop.f32.mrf.mxu0  ;;  %2856 = vmatmul.mubr.msk.f32.gmra.mxu0 %vm214_vm0, %v3172_v20  ;;  %v623_v42 = vmin.f32 %v2568_v36, %v2574_v41  ;;  %2911 = vmatprep.mubr.msk.f32.mxu1 %vm214_vm0, %v3923_v17 }
 0x11a   : > { %v604_v40 = vmin.f32 %v2515_v34, %v2521_v38  ;;  %2858 = vmatprep.mubr.msk.f32.mxu0 %vm214_vm0, %v3156_v18  ;;  %v542_v44 = vpop.f32.mrf.mxu1 }
 0x11b   : > { %v407_v24 = vpop.f32.mrf.mxu0  ;;  %v622_v45 = vmin.f32 %v522_v37, %v542_v44 }
 0x11c   : > { %v603_v22 = vmin.f32 %v387_v35, %v407_v24  ;;  %v2577_v46 = vpop.f32.mrf.mxu1  ;;  %2912 = vmatmul.mubr.msk.f32.gmra.mxu1 %vm214_vm0, %v3902_v15 }
 0x11d   : > { %v2524_v43 = vpop.f32.mrf.mxu0  ;;  %2859 = vmatmul.mubr.msk.f32.gmra.mxu0 %vm214_vm0, %v3140_v16  ;;  %v625_v48 = vmin.f32 %v2571_v28, %v2577_v46  ;;  %2914 = vmatprep.mubr.msk.f32.mxu1 %vm214_vm0, %v3881_v13 }
 0x11e   : > { %v606_v20 = vmin.f32 %v602_v30, %v2524_v43  ;;  %2861 = vmatprep.mubr.msk.f32.mxu0 %vm214_vm0, %v3124_v14  ;;  %v552_v50 = vpop.f32.mrf.mxu1 }
 0x11f   : > { %v417_v18 = vpop.f32.mrf.mxu0  ;;  %v624_v51 = vmin.f32 %v532_v39, %v552_v50 }
 0x120   : > { %v605_v47 = vmin.f32 %v601_v26, %v417_v18  ;;  %v2580_v52 = vpop.f32.mrf.mxu1  ;;  %2915 = vmatmul.mubr.msk.f32.gmra.mxu1 %vm214_vm0, %v3860_v11 }
 0x121   : > { %v2527_v49 = vpop.f32.mrf.mxu0  ;;  %2862 = vmatmul.mubr.msk.f32.gmra.mxu0 %vm214_vm0, %v3108_v12  ;;  %v627_v54 = vmin.f32 %v623_v42, %v2580_v52  ;;  %2917 = vmatprep.mubr.msk.f32.mxu1 %vm214_vm0, %v3839_v9 }
 0x122   : > { %v608_v16 = vmin.f32 %v604_v40, %v2527_v49  ;;  %2864 = vmatprep.mubr.msk.f32.mxu0 %vm214_vm0, %v3092_v10  ;;  %v562_v56 = vpop.f32.mrf.mxu1 }
 0x123   : > { %v427_v14 = vpop.f32.mrf.mxu0  ;;  %v626_v57 = vmin.f32 %v622_v45, %v562_v56 }
 0x124   : > { %v607_v53 = vmin.f32 %v603_v22, %v427_v14  ;;  %v2583_v58 = vpop.f32.mrf.mxu1  ;;  %2918 = vmatmul.mubr.msk.f32.gmra.mxu1 %vm214_vm0, %v3818_v6 }
 0x125   : > { %v2530_v55 = vpop.f32.mrf.mxu0  ;;  %2865 = vmatmul.mubr.msk.f32.gmra.mxu0 %vm214_vm0, %v3071_v7  ;;  %v629_v60 = vmin.f32 %v625_v48, %v2583_v58  ;;  %2920 = vmatprep.mubr.msk.f32.mxu1 %vm214_vm0, %v3799_v3 }
 0x126   : > { %v610_v12 = vmin.f32 %v606_v20, %v2530_v55  ;;  %2867 = vmatprep.mubr.msk.f32.mxu0 %vm214_vm0, %v3051_v5  ;;  %v572_v62 = vpop.f32.mrf.mxu1 }
 0x127   : > { %v437_v10 = vpop.f32.mrf.mxu0  ;;  %v628_v9 = vmin.f32 %v624_v51, %v572_v62 }
 0x128   : > { %v609_v59 = vmin.f32 %v605_v47, %v437_v10  ;;  %v2586_v5 = vpop.f32.mrf.mxu1  ;;  %2921 = vmatmul.mubr.msk.f32.gmra.mxu1 %vm214_vm0, %v3780_v2 }
 0x129   : > { %v2533_v61 = vpop.f32.mrf.mxu0  ;;  %2868 = vmatmul.mubr.msk.f32.gmra.mxu0 %vm214_vm0, %v3048_v4  ;;  %v631_v6 = vmin.f32 %v627_v54, %v2586_v5  ;;  %2923 = vmatprep.mubr.msk.f32.mxu1 %vm214_vm0, %v3763_v1 }
 0x12a   : > { %v613_v7 = vmin.f32 %v609_v59, %v610_v12  ;;  %v612_v63 = vmin.f32 %v608_v16, %v2533_v61  ;;  %v582_v15 = vpop.f32.mrf.mxu1 }
 0x12b   : > { %v447_v11 = vpop.f32.mrf.mxu0  ;;  %v630_v17 = vmin.f32 %v626_v57, %v582_v15 }
 0x12c   : > { %v611_v13 = vmin.f32 %v607_v53, %v447_v11  ;;  %v2589_v19 = vpop.f32.mrf.mxu1  ;;  %2924 = vmatmul.mubr.msk.f32.gmra.mxu1 %vm214_vm0, %v3751_v0 }
 0x12d   : > { %v634_v21 = vmin.f32 %v630_v17, %v631_v6  ;;  %v633_v23 = vmin.f32 %v629_v60, %v2589_v19 }
 0x12e   : > { %v614_v3 = vmin.f32 %v611_v13, %v612_v63  ;;  %v592_v25 = vpop.f32.mrf.mxu1 }
 0x12f   : > { %v632_v27 = vmin.f32 %v628_v9, %v592_v25 }
 0x130   : > { %v615_v4 = vmin.f32 %v613_v7, %v614_v3 }
 0x131   : > { %v635_v29 = vmin.f32 %v632_v27, %v633_v23 }
 0x132   : > { %v616_v10 = vrot.slane %v615_v4, 4 }
 0x133   : > { %v4060_v32 = vmin.f32 %v634_v21, %v635_v29 }
 0x134   : > { %v617_v5 = vmin.f32 %v615_v4, %v616_v10 }
 0x135   : > { %v637_v3 = vrot.slane %v4060_v32, 4 }
 0x136   : > { %v618_v23 = vrot.slane %v617_v5, 2 }
 0x14d   : > { %v2624_v2 = vpop.f32.mrf.mxu0 }
 0x14f   : > { %v773_v33 = vpop.f32.mrf.mxu0 }
 0x150   : > { %v2680_v1 = vpop.f32.mrf.mxu1 }
 0x151   : > { %v2627_v34 = vpop.f32.mrf.mxu0 }
 0x152   : > { %v918_v31 = vpop.f32.mrf.mxu1 }
 0x153   : > { %v783_v35 = vpop.f32.mrf.mxu0 }
 0x154   : > { %v2683_v8 = vpop.f32.mrf.mxu1 }
 0x155   : > { %v2630_v36 = vpop.f32.mrf.mxu0 }
 0x156   : > { %v998_v37 = vmin.f32 %v2624_v2, %v2630_v36  ;;  %v928_v26 = vpop.f32.mrf.mxu1 }
 0x157   : > { %v793_v30 = vpop.f32.mrf.mxu0 }
 0x158   : > { %v997_v28 = vmin.f32 %v773_v33, %v793_v30  ;;  %v2686_v40 = vpop.f32.mrf.mxu1  ;;  %v638_v33 = vmin.f32 %v4060_v32, %v637_v3 }
 0x159   : > { %v2633_v0 = vpop.f32.mrf.mxu0  ;;  %v1019_v41 = vmin.f32 %v2680_v1, %v2686_v40  ;;  %v619_v1 = vmin.f32 %v617_v5, %v618_v23 }
 0x15a   : > { %v1000_v38 = vmin.f32 %v2627_v34, %v2633_v0  ;;  %v938_v42 = vpop.f32.mrf.mxu1 }
 0x15b   : > { %v803_v39 = vpop.f32.mrf.mxu0  ;;  %v1018_v44 = vmin.f32 %v918_v31, %v938_v42  ;;  %v639_v31 = vrot.slane %v638_v33, 2 }
 0x15c   : > { %v999_v24 = vmin.f32 %v783_v35, %v803_v39  ;;  %v2689_v45 = vpop.f32.mrf.mxu1 }
 0x15d   : > { %v2636_v22 = vpop.f32.mrf.mxu0  ;;  %v1021_v46 = vmin.f32 %v2683_v8, %v2689_v45  ;;  %v620_v8 = vrot.slane %v619_v1, 1 }
 0x15e   : > { %v1002_v43 = vmin.f32 %v998_v37, %v2636_v22  ;;  %v948_v48 = vpop.f32.mrf.mxu1 }
 0x15f   : > { %v813_v20 = vpop.f32.mrf.mxu0  ;;  %v1020_v50 = vmin.f32 %v928_v26, %v948_v48  ;;  %v640_v26 = vmin.f32 %v638_v33, %v639_v31  ;;  %v621_v40 = vmin.f32 %v619_v1, %v620_v8 }
 0x160   : > { %v1001_v18 = vmin.f32 %v997_v28, %v813_v20  ;;  %v2692_v51 = vpop.f32.mrf.mxu1 }
 0x161   : > { %v2639_v47 = vpop.f32.mrf.mxu0  ;;  %v1023_v52 = vmin.f32 %v1019_v41, %v2692_v51  ;;  %v641_v22 = vrot.slane %v640_v26, 1 }
 0x162   : > { %v1004_v49 = vmin.f32 %v1000_v38, %v2639_v47  ;;  %v958_v54 = vpop.f32.mrf.mxu1 }
 0x163   : > { %v823_v16 = vpop.f32.mrf.mxu0  ;;  %v1022_v56 = vmin.f32 %v1018_v44, %v958_v54  ;;  %v642_v44 = vmin.f32 %v640_v26, %v641_v22 }
 0x164   : > { %v1003_v14 = vmin.f32 %v999_v24, %v823_v16  ;;  %v2695_v57 = vpop.f32.mrf.mxu1 }
 0x165   : > { %v2642_v53 = vpop.f32.mrf.mxu0  ;;  %v1025_v59 = vmin.f32 %v1021_v46, %v2695_v57 }
 0x166   : > { %v1006_v55 = vmin.f32 %v1002_v43, %v2642_v53  ;;  %v968_v61 = vpop.f32.mrf.mxu1 }
 0x167   : > { %v833_v12 = vpop.f32.mrf.mxu0  ;;  %v1024_v63 = vmin.f32 %v1020_v50, %v968_v61 }
 0x168   : > { %v1005_v58 = vmin.f32 %v1001_v18, %v833_v12  ;;  %v2698_v11 = vpop.f32.mrf.mxu1 }
 0x169   : > { %v2645_v60 = vpop.f32.mrf.mxu0  ;;  %v1027_v6 = vmin.f32 %v1023_v52, %v2698_v11 }
 0x16a   : > { %v1009_v62 = vmin.f32 %v1005_v58, %v1006_v55  ;;  %v1008_v7 = vmin.f32 %v1004_v49, %v2645_v60  ;;  %v978_v15 = vpop.f32.mrf.mxu1 }
 0x16b   : > { %v843_v9 = vpop.f32.mrf.mxu0  ;;  %v1026_v19 = vmin.f32 %v1022_v56, %v978_v15 }
 0x16c   : > { %v1007_v13 = vmin.f32 %v1003_v14, %v843_v9  ;;  %v2701_v21 = vpop.f32.mrf.mxu1 }
 0x16d   : > { %v1030_v27 = vmin.f32 %v1026_v19, %v1027_v6  ;;  %v1029_v29 = vmin.f32 %v1025_v59, %v2701_v21 }
 0x16e   : > { %v1010_v17 = vmin.f32 %v1007_v13, %v1008_v7  ;;  %v988_v2 = vpop.f32.mrf.mxu1 }
 0x16f   : > { %v1028_v35 = vmin.f32 %v1024_v63, %v988_v2 }
 0x170   : > { %v1011_v25 = vmin.f32 %v1009_v62, %v1010_v17 }
 0x171   : > { %v1031_v4 = vmin.f32 %v1028_v35, %v1029_v29 }
 0x172   : > { %v1012_v34 = vrot.slane %v1011_v25, 4 }
 0x173   : > { %v1032_v30 = vmin.f32 %v1030_v27, %v1031_v4 }
 0x174   : > { %v1013_v36 = vmin.f32 %v1011_v25, %v1012_v34 }
 0x175   : > { %v1033_v0 = vrot.slane %v1032_v30, 4 }
 0x176   : > { %v1014_v37 = vrot.slane %v1013_v36, 2 }
 0x177   : > { %v1034_v39 = vmin.f32 %v1032_v30, %v1033_v0 }
 0x178   : > { %v1015_v28 = vmin.f32 %v1013_v36, %v1014_v37 }
 0x179   : > { %v1035_v41 = vrot.slane %v1034_v39, 2 }
 0x17a   : > { %v1016_v38 = vrot.slane %v1015_v28, 1 }
 0x17b   : > { %v1036_v42 = vmin.f32 %v1034_v39, %v1035_v41 }
 0x17c   : > { %v1017_v24 = vmin.f32 %v1015_v28, %v1016_v38 }
 0x17d   : > { %v1037_v43 = vrot.slane %v1036_v42, 1 }
 0x17e   : > { %v4064_v32 = vsel %vm1831_vm1, %v621_v40, %v1017_v24 }
 0x17f   : > { %v1038_v20 = vmin.f32 %v1036_v42, %v1037_v43 }
 0x181   : > { %v4066_v45 = vsel %vm1831_vm1, %v642_v44, %v1038_v20 }
 0x18d   : > { %v2736_v18 = vpop.f32.mrf.mxu0 }
 0x18f   : > { %v1169_v46 = vpop.f32.mrf.mxu0 }
 0x190   : > { %v4068_v47 = vpop.f32.mrf.mxu1 }
 0x191   : > { %v2739_v48 = vpop.f32.mrf.mxu0 }
 0x192   : > { %v4070_v49 = vpop.f32.mrf.mxu1 }
 0x193   : > { %v1179_v50 = vpop.f32.mrf.mxu0 }
 0x194   : > { %v2795_v16 = vpop.f32.mrf.mxu1 }
 0x195   : > { %v2742_v51 = vpop.f32.mrf.mxu0 }
 0x196   : > { %v1324_v14 = vpop.f32.mrf.mxu1  ;;  %v1394_v8 = vmin.f32 %v2736_v18, %v2742_v51 }
 0x197   : > { %v1189_v52 = vpop.f32.mrf.mxu0 }
 0x198   : > { %v4072_v53 = vpop.f32.mrf.mxu1  ;;  %v1393_v36 = vmin.f32 %v1169_v46, %v1189_v52 }
 0x199   : > { %v2745_v54 = vpop.f32.mrf.mxu0  ;;  %v1415_v18 = vmin.f32 %v4068_v47, %v4072_v53 }
 0x19a   : > { %v1334_v55 = vpop.f32.mrf.mxu1  ;;  %v1396_v21 = vmin.f32 %v2739_v48, %v2745_v54 }
 0x19b   : > { %v1199_v56 = vpop.f32.mrf.mxu0  ;;  %v1414_v44 = vmin.f32 %v4070_v49, %v1334_v55 }
 0x19c   : > { %v2801_v12 = vpop.f32.mrf.mxu1  ;;  %v1395_v23 = vmin.f32 %v1179_v50, %v1199_v56 }
 0x19d   : > { %v2748_v57 = vpop.f32.mrf.mxu0  ;;  %v1417_v4 = vmin.f32 %v2795_v16, %v2801_v12 }
 0x19e   : > { %v1344_v10 = vpop.f32.mrf.mxu1  ;;  %v1398_v40 = vmin.f32 %v1394_v8, %v2748_v57 }
 0x19f   : > { %v1209_v58 = vpop.f32.mrf.mxu0  ;;  %v1416_v31 = vmin.f32 %v1324_v14, %v1344_v10 }
 0x1a0   : > { %v2804_v59 = vpop.f32.mrf.mxu1  ;;  %v1397_v28 = vmin.f32 %v1393_v36, %v1209_v58 }
 0x1a1   : > { %v2751_v60 = vpop.f32.mrf.mxu0  ;;  %v1419_v12 = vmin.f32 %v1415_v18, %v2804_v59 }
 0x1a2   : > { %v1354_v61 = vpop.f32.mrf.mxu1  ;;  %v1400_v33 = vmin.f32 %v1396_v21, %v2751_v60 }
 0x1a3   : > { %v1219_v62 = vpop.f32.mrf.mxu0  ;;  %v1418_v16 = vmin.f32 %v1414_v44, %v1354_v61 }
 0x1a4   : > { %v2807_v7 = vpop.f32.mrf.mxu1  ;;  %v1399_v34 = vmin.f32 %v1395_v23, %v1219_v62 }
 0x1a5   : > { %v2754_v63 = vpop.f32.mrf.mxu0  ;;  %v1421_v41 = vmin.f32 %v1417_v4, %v2807_v7 }
 0x1a6   : > { %v1364_v9 = vpop.f32.mrf.mxu1  ;;  %v1402_v20 = vmin.f32 %v1398_v40, %v2754_v63 }
 0x1a7   : > { %v1229_v11 = vpop.f32.mrf.mxu0  ;;  %v1420_v22 = vmin.f32 %v1416_v31, %v1364_v9 }
 0x1a8   : > { %v2810_v5 = vpop.f32.mrf.mxu1  ;;  %v1401_v24 = vmin.f32 %v1397_v28, %v1229_v11 }
 0x1a9   : > { %v2757_v13 = vpop.f32.mrf.mxu0  ;;  %v1423_v62 = vmin.f32 %v1419_v12, %v2810_v5 }
 0x1aa   : > { %v1374_v6 = vpop.f32.mrf.mxu1  ;;  %v1404_v0 = vmin.f32 %v1400_v33, %v2757_v13  ;;  %v1405_v51 = vmin.f32 %v1401_v24, %v1402_v20 }
 0x1ab   : > { %v1239_v15 = vpop.f32.mrf.mxu0  ;;  %v1422_v10 = vmin.f32 %v1418_v16, %v1374_v6 }
 0x1ac   : > { %v2813_v3 = vpop.f32.mrf.mxu1  ;;  %v1403_v26 = vmin.f32 %v1399_v34, %v1239_v15 }
 0x1ad   : > { %v1425_v14 = vmin.f32 %v1421_v41, %v2813_v3  ;;  %v1426_v9 = vmin.f32 %v1422_v10, %v1423_v62 }
 0x1ae   : > { %v1384_v25 = vpop.f32.mrf.mxu1  ;;  %v1406_v46 = vmin.f32 %v1403_v26, %v1404_v0 }
 0x1af   : > { %v1424_v52 = vmin.f32 %v1420_v22, %v1384_v25 }
 0x1b0   : > { %v1407_v57 = vmin.f32 %v1405_v51, %v1406_v46 }
 0x1b1   : > { %v1427_v49 = vmin.f32 %v1424_v52, %v1425_v14 }
 0x1b2   : > { %v1408_v63 = vrot.slane %v1407_v57, 4 }
 0x1b3   : > { %v1428_v53 = vmin.f32 %v1426_v9, %v1427_v49 }
 0x1b4   : > { %v1409_v6 = vmin.f32 %v1407_v57, %v1408_v63 }
 0x1b5   : > { %v1429_v31 = vrot.slane %v1428_v53, 4 }
 0x1b6   : > { %v1410_v40 = vrot.slane %v1409_v6, 2 }
 0x1b7   : > { %v1430_v22 = vmin.f32 %v1428_v53, %v1429_v31 }
 0x1cd   : > { %v4074_v17 = vpop.f32.mrf.mxu0 }
 0x1cf   : > { %v1565_v19 = vpop.f32.mrf.mxu0 }
 0x1d0   : > { %v4076_v2 = vpop.f32.mrf.mxu1 }
 0x1d1   : > { %v2851_v27 = vpop.f32.mrf.mxu0 }
 0x1d2   : > { %v4078_v1 = vpop.f32.mrf.mxu1 }
 0x1d3   : > { %v1575_v29 = vpop.f32.mrf.mxu0 }
 0x1d4   : > { %v4080_v30 = vpop.f32.mrf.mxu1 }
 0x1d5   : > { %v2854_v35 = vpop.f32.mrf.mxu0 }
 0x1d6   : > { %v4082_v39 = vpop.f32.mrf.mxu1  ;;  %v1790_v3 = vmin.f32 %v4074_v17, %v2854_v35 }
 0x1d7   : > { %v1585_v37 = vpop.f32.mrf.mxu0 }
 0x1d8   : > { %v2910_v43 = vpop.f32.mrf.mxu1  ;;  %v1789_v47 = vmin.f32 %v1565_v19, %v1585_v37 }
 0x1d9   : > { %v2857_v38 = vpop.f32.mrf.mxu0  ;;  %v1811_v17 = vmin.f32 %v4076_v2, %v2910_v43 }
 0x1da   : > { %v1730_v50 = vpop.f32.mrf.mxu1  ;;  %v1792_v21 = vmin.f32 %v2851_v27, %v2857_v38 }
 0x1db   : > { %v1595_v42 = vpop.f32.mrf.mxu0  ;;  %v1810_v19 = vmin.f32 %v4078_v1, %v1730_v50  ;;  %v1411_v50 = vmin.f32 %v1409_v6, %v1410_v40 }
 0x1dc   : > { %v2913_v56 = vpop.f32.mrf.mxu1  ;;  %v1791_v59 = vmin.f32 %v1575_v29, %v1595_v42 }
 0x1dd   : > { %v2860_v48 = vpop.f32.mrf.mxu0  ;;  %v1813_v27 = vmin.f32 %v4080_v30, %v2913_v56  ;;  %v1431_v30 = vrot.slane %v1430_v22, 2 }
 0x1de   : > { %v1740_v60 = vpop.f32.mrf.mxu1  ;;  %v1794_v5 = vmin.f32 %v1790_v3, %v2860_v48 }
 0x1df   : > { %v1605_v54 = vpop.f32.mrf.mxu0  ;;  %v1812_v35 = vmin.f32 %v4082_v39, %v1740_v60  ;;  %v1432_v57 = vmin.f32 %v1430_v22, %v1431_v30 }
 0x1e0   : > { %v2916_v7 = vpop.f32.mrf.mxu1  ;;  %v1793_v23 = vmin.f32 %v1789_v47, %v1605_v54  ;;  %v1412_v54 = vrot.slane %v1411_v50, 1 }
 0x1e1   : > { %v2863_v58 = vpop.f32.mrf.mxu0  ;;  %v1815_v42 = vmin.f32 %v1811_v17, %v2916_v7 }
 0x1e2   : > { %v1750_v13 = vpop.f32.mrf.mxu1  ;;  %v1796_v34 = vmin.f32 %v1792_v21, %v2863_v58  ;;  %v1413_v60 = vmin.f32 %v1411_v50, %v1412_v54 }
 0x1e3   : > { %v1615_v55 = vpop.f32.mrf.mxu0  ;;  %v1814_v38 = vmin.f32 %v1810_v19, %v1750_v13 }
 0x1e4   : > { %v2919_v15 = vpop.f32.mrf.mxu1  ;;  %v1795_v36 = vmin.f32 %v1791_v59, %v1615_v55  ;;  %v1433_v55 = vrot.slane %v1432_v57, 1  ;;  %v1838_v9 = vsel %vm1833_vm2, %v4064_v32, %v1413_v60 }
 0x1e5   : > { %v2866_v11 = vpop.f32.mrf.mxu0  ;;  %v1817_v20 = vmin.f32 %v1813_v27, %v2919_v15 }
 0x1e6   : > { %v1760_v33 = vpop.f32.mrf.mxu1  ;;  %v1798_v37 = vmin.f32 %v1794_v5, %v2866_v11  ;;  %v1434_v47 = vmin.f32 %v1432_v57, %v1433_v55 }
 0x1e7   : > { %v1625_v61 = vpop.f32.mrf.mxu0  ;;  %v1816_v46 = vmin.f32 %v1812_v35, %v1760_v33 }
 0x1e8   : > { %v1797_v4 = vmin.f32 %v1793_v23, %v1625_v61  ;;  %v2922_v28 = vpop.f32.mrf.mxu1  ;;  %v1834_v3 = vsel %vm1833_vm2, %v4066_v45, %v1434_v47 }
 0x1e9   : > { %v2869_v25 = vpop.f32.mrf.mxu0  ;;  %v1819_v51 = vmin.f32 %v1815_v42, %v2922_v28 }
 0x1ea   : > { %v1800_v0 = vmin.f32 %v1796_v34, %v2869_v25  ;;  %v1770_v29 = vpop.f32.mrf.mxu1  ;;  %v1801_v24 = vmin.f32 %v1797_v4, %v1798_v37 }
 0x1eb   : > { %v1635_v8 = vpop.f32.mrf.mxu0  ;;  %v1818_v48 = vmin.f32 %v1814_v38, %v1770_v29 }
 0x1ec   : > { %v1799_v26 = vmin.f32 %v1795_v36, %v1635_v8  ;;  %v2925_v44 = vpop.f32.mrf.mxu1 }
 0x1ed   : > { %v1821_v2 = vmin.f32 %v1817_v20, %v2925_v44  ;;  %v1822_v52 = vmin.f32 %v1818_v48, %v1819_v51 }
 0x1ee   : > { %v1802_v41 = vmin.f32 %v1799_v26, %v1800_v0  ;;  %v1780_v18 = vpop.f32.mrf.mxu1 }
 0x1ef   : > { %v1820_v43 = vmin.f32 %v1816_v46, %v1780_v18 }
 0x1f0   : > { %v1803_v1 = vmin.f32 %v1801_v24, %v1802_v41 }
 0x1f1   : > { %v1823_v39 = vmin.f32 %v1820_v43, %v1821_v2 }
 0x1f2   : > { %v1804_v16 = vrot.slane %v1803_v1, 4 }
 0x1f3   : > { %v1824_v12 = vmin.f32 %v1822_v52, %v1823_v39 }
 0x1f4   : > { %v1805_v14 = vmin.f32 %v1803_v1, %v1804_v16 }
 0x1f5   : > { %v1825_v58 = vrot.slane %v1824_v12, 4 }
 0x1f6   : > { %v1806_v56 = vrot.slane %v1805_v14, 2 }
 0x1f7   : > { %v1826_v49 = vmin.f32 %v1824_v12, %v1825_v58 }
 0x1f8   : > { %v1807_v10 = vmin.f32 %v1805_v14, %v1806_v56 }
 0x1f9   : > { %v1827_v63 = vrot.slane %v1826_v49, 2 }
 0x1fa   : > { %v1808_v62 = vrot.slane %v1807_v10, 1 }
 0x1fb   : > { %v1828_v13 = vmin.f32 %v1826_v49, %v1827_v63 }
 0x1fc   : > { %v1809_v7 = vmin.f32 %v1807_v10, %v1808_v62 }
 0x1fd   : > { %v1829_v61 = vrot.slane %v1828_v13, 1 }
 0x1fe   : > { %v1839_v11 = vsel %vm1835_vm3, %v1838_v9, %v1809_v7 }
 0x1ff   : > { %v1848_v53 = vmax.f32 %v1839_v11, 0.0  ;;  %v1830_v15 = vmin.f32 %v1828_v13, %v1829_v61 }
 0x201   : > { %2950 = vrsqrt.f32 %v1848_v53  ;;  %v1836_v21 = vsel %vm1835_vm3, %v1834_v3, %v1830_v15  ;;  %vm1851_vm5 = vcmp.eq.f32.partialorder %v1848_v53, inf  ;;  %v1854_v4 = vand.u32 2147483648, %v1848_v53 }
 0x202   : > { %v1840_v59 = vmax.f32 %v1836_v21, 0.0  ;;  %vm1853_vm8 = vcmp.eq.f32.partialorder %v1848_v53, 0.0 }
 0x204   : > { %2952 = vrsqrt.f32 %v1840_v59  ;;  %vm1843_vm4 = vcmp.eq.f32.partialorder %v1840_v59, inf  ;;  %v1846_v5 = vand.u32 2147483648, %v1840_v59  ;;  %vm1845_vm6 = vcmp.eq.f32.partialorder %v1840_v59, 0.0 }
 0x20e   : > { %v2951_v23 = vpop.eup %2950 }
 0x20f   : > { %v1850_v6 = vmul.f32 %v2951_v23, %v1848_v53 }
 0x211   : > { %v2953_v25 = vpop.eup %2952  ;;  %v1852_v34 = vsel %vm1851_vm5, %v1848_v53, %v1850_v6 }
 0x212   : > { %v1842_v33 = vmul.f32 %v2953_v25, %v1840_v59  ;;  %v1855_v45 = vsel %vm1853_vm8, %v1854_v4, %v1852_v34 }
 0x213   : > { %v1860_v8 = vsel %vm1856_vm7, %v1855_v45, 0.0 }
 0x214   : > { %v1844_v32 = vsel %vm1843_vm4, %v1840_v59, %v1842_v33 }
 0x215   : > { %v1847_v36 = vsel %vm1845_vm6, %v1846_v5, %v1844_v32 }
 0x216   : > { %v1857_v31 = vsel %vm1856_vm7, %v1847_v36, 0.0 }
 0x217   : > { %1858 = vadd.xlane.f32.xlu0 %v1857_v31 }
 0x21b   : > { %1861 = vadd.xlane.f32.xlu0 %v1860_v8 }
 0x2a0   : > { %v1859_v28 = vpop.xlane.xlu0 %1858 }
 0x2a4   : > { %v1862_v19 = vpop.xlane.xlu0 %1861 }
 0x2a5   : > { %v1863_v37 = vadd.f32 %v1862_v19, %v1859_v28 }
 0x2a7   : > { %v1864_v0 = vmul.f32 0.0078125, %v1863_v37 }
 0x2a9   : > { %1866 = vst.msk [vmem:[%s181_s28] sm:$0xf] %vm1865_vm9, %v1864_v0 }
 0x2aa PF: > { %s12_s11 = sadd.s32 1, %s2976_s11   ;;  %s4110_s9 = smov %s2972_s10 }
 0x2ab   : > { %p9_p5 = scmp.ge.s32.totalorder %s12_s11, 4   ;;  %s4111_s10 = smov %s4113_s12 }
 0x2ad   :  { %11 = sbr.rel (!%p9_p5) target bundleno = 2 (0x2), region = 61 }

</bundles_post_ra>
